<compile_context>
chip_gen: v7x
topology: tpu7x:2x2x1
jax: 0.10.0
libtpu: 0.0.40
codegen_flags: <defaults>
</compile_context>

<pallas_src>
import math

import numpy as np
import jax
import jax.numpy as jnp
from jax.experimental import pallas as pl
from jax.experimental.pallas import tpu as pltpu

# ---- hyper-params mirroring CNNGraphClassifier.__init__ (small synthetic sizes) ----
BATCH        = 2
SEQ_LEN      = 8        # extractor.padding_size == Conv1d in_channels
EMB_SIZE     = 16       # word-embedding vector_size == Conv1d spatial length
VOCAB        = 50       # num_words (row 0 of the table is the zero padding vector)
KERNEL_SIZES = (2, 3, 4, 5)
OUT_SIZE     = 32
STRIDE       = 2
N_GRAPH      = 200      # per reblog type -> fc_graph input = 400
N_ADD        = 10       # nontext features (x_add)
GRAPH_HID    = 128
GRAPH_OUT    = 32

# column layout of x (mirrors the np index-selection in the torch forward):
TAG_R     = slice(0, SEQ_LEN)
TAG_NR    = slice(SEQ_LEN, 2 * SEQ_LEN)
GRAPH_R   = slice(2 * SEQ_LEN, 2 * SEQ_LEN + N_GRAPH)
GRAPH_NR  = slice(2 * SEQ_LEN + N_GRAPH, 2 * SEQ_LEN + 2 * N_GRAPH)
GRAPH_ALL = slice(2 * SEQ_LEN, 2 * SEQ_LEN + 2 * N_GRAPH)    # reblog+nonreblog contiguous
ADD       = slice(2 * SEQ_LEN + 2 * N_GRAPH, 2 * SEQ_LEN + 2 * N_GRAPH + N_ADD)
N_FEATS   = 2 * SEQ_LEN + 2 * N_GRAPH + N_ADD


def conv_out_len(l, k, s):
    return (l - k) // s + 1


# ---- derived static sizes ----
NK        = len(KERNEL_SIZES)                                     # 4
KMAX      = max(KERNEL_SIZES)                                     # 5
L_CONVS   = [conv_out_len(EMB_SIZE, k, STRIDE) for k in KERNEL_SIZES]
L_POOLS   = [conv_out_len(lc, k, STRIDE) for lc, k in zip(L_CONVS, KERNEL_SIZES)]
Q_MAX     = max(L_POOLS)                                          # 4 shared pool positions
TOTAL_LP  = 2 * sum(L_POOLS)                                      # 20
CONV_N    = NK * OUT_SIZE                                         # 128 -> lane-dense
B2        = 2 * BATCH                                             # branch-major (reblog, nonreblog)
QB        = Q_MAX * B2                                            # 16 rows (q, branch, b)
VOC1      = VOCAB + 1                                             # 51 (row 0 = padding)
EW_LANES  = SEQ_LEN * EMB_SIZE                                    # 128 lanes = (c, e)
WIN_SHIFT = STRIDE * STRIDE                                       # pool stride * conv stride = 4
E_EXT     = EW_LANES + EMB_SIZE                                   # 144 (room for shifted windows)
FLAT_SIZE = OUT_SIZE * TOTAL_LP + N_ADD + GRAPH_OUT               # 682 (analog of torch's 3762)

# NOTE: the packed-parameter layout below hard-codes conv/pool stride == 2, a shared
# Q_MAX across kernel sizes and 128-lane groupings -- correct for these hyper-params.
assert EW_LANES == 128 and CONV_N == 128 and STRIDE == 2 and QB == Q_MAX * B2


# ---- packed-parameter (PK_ROWS, 128) row layout, every section 8-row aligned ----
def _pk_layout(*sizes):
    offs, off = [], 0
    for s in sizes:
        offs.append(off)
        off = ((off + s + 7) // 8) * 8
    return offs, off


(_EMB_OFF, _QMASK_OFF, _BC_OFF, _GB1_OFF, _GW2_OFF, _GB2_OFF, _WPOST_OFF, _SEL_OFF,
 _WGRAPH_OFF, _FCB_OFF, _BSEL_OFF, _WADD_OFF, _WBIG_OFF, _GW1_OFF), PK_ROWS = _pk_layout(
    SEQ_LEN * VOC1,     # block-diagonal embedding table          (408, 128)
    Q_MAX,              # per-pool-position validity masks        (4, 128)
    1,                  # conv bias (all kernel-size groups)      (1, 128)
    1,                  # fc_graph bias 1                         (1, 128)
    GRAPH_HID,          # fc_graph Linear(128,32), lane padded    (128, 128)
    1,                  # fc_graph bias 2                         (1, 128)
    NK * QB,            # pre-permuted, per-kernel-size masked final-FC post weights (64, 128)
    BATCH,              # batch-selection over pooled rows        (2, 128)
    1,                  # final-FC graph weights                  (1, 128)
    1,                  # final-FC bias                           (1, 128)
    BATCH,              # output row->lane scatter                (2, 128)
    1,                  # final-FC x_add weights                  (1, 128)
    KMAX * EW_LANES,    # window-expanded conv weights, per offset j (640, 128)
    N_FEATS,            # fc_graph Linear(400,128) rows placed at x's graph columns (426, 128)
)


def _sigmoid(z):
    return 1.0 / (1.0 + jnp.exp(-z))


# ------------------------------- fused Pallas kernel -------------------------------

def fused_kernel(oh_ref, x_ref, pk_ref, out_ref, e_scr, lhs_scr):
    f32 = jnp.float32

    # --- embedding lookup: one-hot ids @ block-diagonal table (MXU gather) ---
    e_wide = jnp.dot(oh_ref[...], pk_ref[_EMB_OFF:_EMB_OFF + SEQ_LEN * VOC1, :],
                     preferred_element_type=f32)                  # (B2, 128), lanes = (c, e)
    e_scr[...] = jnp.zeros((B2, E_EXT), f32)
    e_scr[:, 0:EW_LANES] = e_wide

    # --- shared im2col: per pool position q, a 4q-shifted, validity-masked window ---
    for q in range(Q_MAX):
        win = e_scr[:, WIN_SHIFT * q:WIN_SHIFT * q + EW_LANES]    # (B2, 128)
        lhs_scr[q * B2:(q + 1) * B2, :] = win * pk_ref[_QMASK_OFF + q:_QMASK_OFF + q + 1, :]
    lhs = lhs_scr[...]                                            # (QB, 128), rows = (q, branch, b)

    # --- 8 conv branches x 4 kernel sizes + bias + ReLU, incremental MaxPool1d, and the
    #     fc_post part of the final Linear, all over lane-dense 128-channel blocks ---
    bc = pk_ref[_BC_OFF:_BC_OFF + 1, :]
    run = None
    prod = jnp.zeros((QB, CONV_N), jnp.float32)
    for j in range(KMAX):                                         # conv window offset j
        wj = pk_ref[_WBIG_OFF + j * EW_LANES:_WBIG_OFF + (j + 1) * EW_LANES, :]
        blk = jnp.maximum(jnp.dot(lhs, wj, preferred_element_type=f32) + bc, 0.0)
        run = blk if run is None else jnp.maximum(run, blk)       # running max == window j+1
        if (j + 1) in KERNEL_SIZES:                               # per-kernel-size masked fc weights
            ki = KERNEL_SIZES.index(j + 1)
            prod = prod + run * pk_ref[_WPOST_OFF + ki * QB:_WPOST_OFF + (ki + 1) * QB, :]
    post = jnp.dot(pk_ref[_SEL_OFF:_SEL_OFF + BATCH, 0:QB], prod,
                   preferred_element_type=f32)                    # (B, 128): sum branch & q per batch
    post_c = jnp.sum(post, axis=1, keepdims=True)                 # (B, 1)

    # --- fc_graph MLP (graph columns picked by zero-padded weight rows) + x_add ---
    h = jnp.dot(x_ref[...], pk_ref[_GW1_OFF:_GW1_OFF + N_FEATS, :], preferred_element_type=f32)
    h = jnp.maximum(h + pk_ref[_GB1_OFF:_GB1_OFF + 1, :], 0.0)    # (B, 128)
    g = jnp.dot(h, pk_ref[_GW2_OFF:_GW2_OFF + GRAPH_HID, :], preferred_element_type=f32)
    g = jnp.maximum(g + pk_ref[_GB2_OFF:_GB2_OFF + 1, :], 0.0)    # (B, 128); lanes >= 32 stay 0
    graph_c = jnp.sum(g * pk_ref[_WGRAPH_OFF:_WGRAPH_OFF + 1, :], axis=1, keepdims=True)
    add_c = jnp.sum(x_ref[:, ADD] * pk_ref[_WADD_OFF:_WADD_OFF + 1, 0:N_ADD],
                    axis=1, keepdims=True)

    # --- fc_block: Linear(682,1) (distributed above) + Dropout(p=0) identity + Sigmoid ---
    logit = post_c + graph_c + add_c + pk_ref[_FCB_OFF:_FCB_OFF + 1, 0:1]
    sig = _sigmoid(logit)                                         # (B, 1)
    # lane-dense output: out[0, b] = sigmoid(logit[b])
    out_ref[...] = jnp.sum(sig * pk_ref[_BSEL_OFF:_BSEL_OFF + BATCH, :], axis=0, keepdims=True)


# ------------------------------- parameter packing -------------------------------

def prepare_params(params):
    """One-time preprocessing: pack ALL weights (pre-permuted / pre-masked) into one
    (PK_ROWS, 128) f32 buffer so the kernel needs a single parameter DMA and no
    runtime transposes, gathers or lane selects."""
    pk = np.zeros((PK_ROWS, 128), np.float32)
    fc_w = np.asarray(params['fc_w'], np.float32)                 # (682, 1)
    n_post = OUT_SIZE * TOTAL_LP

    # block-diagonal embedding table: row c*VOC1+v, lane c*EMB_SIZE+e  ->  emb[v, e]
    emb = np.asarray(params['emb'], np.float32)                   # (51, 16)
    for c in range(SEQ_LEN):
        pk[_EMB_OFF + c * VOC1:_EMB_OFF + (c + 1) * VOC1,
           c * EMB_SIZE:(c + 1) * EMB_SIZE] = emb

    # per-pool-position validity masks over (c, e') lanes: zero where e' + 4q >= EMB_SIZE
    evalid = np.arange(EMB_SIZE)
    for q in range(Q_MAX):
        pk[_QMASK_OFF + q, :EW_LANES] = np.tile(
            (evalid + WIN_SHIFT * q < EMB_SIZE).astype(np.float32), SEQ_LEN)

    # conv biases and window-expanded conv weights:
    #   block j: row c*EMB_SIZE + (2j + t), lane ki*OUT_SIZE + o  ->  w_k[o, c, t]
    pk[_BC_OFF, :] = np.concatenate(
        [np.asarray(params['conv'][k][1], np.float32) for k in KERNEL_SIZES])
    for ki, k in enumerate(KERNEL_SIZES):
        w = np.asarray(params['conv'][k][0], np.float32)          # (OUT_SIZE, SEQ_LEN, k)
        for j in range(KMAX):
            for t in range(k):
                e = STRIDE * j + t
                if e >= EMB_SIZE:
                    continue
                rows = _WBIG_OFF + j * EW_LANES + np.arange(SEQ_LEN) * EMB_SIZE + e
                pk[rows, ki * OUT_SIZE:(ki + 1) * OUT_SIZE] = w[:, :, t].T

    # fc_graph: Linear(400,128) rows placed at x's graph columns; Linear(128,32) lane-padded
    pk[_GW1_OFF + GRAPH_ALL.start:_GW1_OFF + GRAPH_ALL.stop, :] = np.asarray(params['g_w1'], np.float32)
    pk[_GB1_OFF, :] = np.asarray(params['g_b1'], np.float32)
    pk[_GW2_OFF:_GW2_OFF + GRAPH_HID, :GRAPH_OUT] = np.asarray(params['g_w2'], np.float32)
    pk[_GB2_OFF, :GRAPH_OUT] = np.asarray(params['g_b2'], np.float32)

    # final FC: post part pre-permuted into the (q, branch, b) x channel layout, then split
    # into per-kernel-size lane-masked copies (invalid pool slots simply stay zero).
    fc_post = fc_w[:n_post, 0].reshape(OUT_SIZE, TOTAL_LP)        # torch flatten: [o, concat-L]
    wpost = np.zeros((QB, CONV_N), np.float32)
    seg = 0
    for ki in range(NK):
        lp = L_POOLS[ki]
        for branch in range(2):                                   # 0 = reblog, 1 = nonreblog
            blk = fc_post[:, seg + branch * lp: seg + (branch + 1) * lp]    # (32, lp)
            for q in range(lp):
                for b in range(BATCH):
                    wpost[q * B2 + branch * BATCH + b,
                          ki * OUT_SIZE:(ki + 1) * OUT_SIZE] = blk[:, q]
        seg += 2 * lp
    for ki in range(NK):
        pk[_WPOST_OFF + ki * QB:_WPOST_OFF + (ki + 1) * QB,
           ki * OUT_SIZE:(ki + 1) * OUT_SIZE] = wpost[:, ki * OUT_SIZE:(ki + 1) * OUT_SIZE]
    pk[_WADD_OFF, :N_ADD] = fc_w[n_post:n_post + N_ADD, 0]
    pk[_WGRAPH_OFF, :GRAPH_OUT] = fc_w[n_post + N_ADD:, 0]
    pk[_FCB_OFF, 0] = np.asarray(params['fc_b'], np.float32)[0]

    # batch selection over pooled rows, and row->lane scatter for the lane-dense output
    for b in range(BATCH):
        for branch in range(2):
            for q in range(Q_MAX):
                pk[_SEL_OFF + b, q * B2 + branch * BATCH + b] = 1.0
        pk[_BSEL_OFF + b, b] = 1.0

    return jnp.asarray(pk)


# ------------------------------- forward --------------------------------

_VMEM = pl.BlockSpec(memory_space=pltpu.MemorySpace.VMEM)


@jax.jit
def forward(x, pk):
    # Only remaining wrapper glue: build the tiny (B2, 408) one-hot for the tag ids.
    # TODO(synk): the one-hot compare itself stays in plain JAX (one small fused
    # elementwise op, ~6.5 KB); the actual lookup is the in-kernel MXU matmul.
    ids = x[:, :2 * SEQ_LEN].astype(jnp.int32)                    # (B, 16)
    ids2 = jnp.concatenate([ids[:, :SEQ_LEN], ids[:, SEQ_LEN:]], axis=0)   # (B2, 8) branch-major
    oh = (ids2[:, :, None] == jnp.arange(VOC1, dtype=jnp.int32)).astype(jnp.float32)
    oh = oh.reshape(B2, SEQ_LEN * VOC1)                           # lanes = (c, v)

    out = pl.pallas_call(
        fused_kernel,
        out_shape=jax.ShapeDtypeStruct((1, 128), jnp.float32),
        in_specs=[_VMEM, _VMEM, _VMEM],
        out_specs=_VMEM,
        scratch_shapes=[pltpu.VMEM((B2, E_EXT), jnp.float32),     # zero-extended embeddings
                        pltpu.VMEM((QB, EW_LANES), jnp.float32)], # shared im2col LHS
    )(oh, x, pk)
    return out[0, :BATCH]


# ------------------------------- pure-JAX reference ----------------------------

def reference_forward(x, params):
    emb_table = params['emb']
    tag_r = jnp.take(emb_table, x[:, TAG_R].astype(jnp.int32), axis=0)
    tag_nr = jnp.take(emb_table, x[:, TAG_NR].astype(jnp.int32), axis=0)
    x_add = x[:, ADD].astype(jnp.float32)

    def conv_block(t, w, b, k):
        y = jax.lax.conv_general_dilated(
            t, w, window_strides=(STRIDE,), padding='VALID',
            dimension_numbers=('NCH', 'OIH', 'NCH'))
        y = jnp.maximum(y + b[None, :, None], 0.0)
        lp = conv_out_len(y.shape[-1], k, STRIDE)
        return jnp.stack([jnp.max(y[:, :, p * STRIDE:p * STRIDE + k], axis=-1)
                          for p in range(lp)], axis=-1)

    posts = []
    for k in KERNEL_SIZES:
        w, b = params['conv'][k]
        posts.append(conv_block(tag_r, w, b, k))
        posts.append(conv_block(tag_nr, w, b, k))
    post_embs = jnp.concatenate(posts, axis=2).reshape(x.shape[0], -1)

    graph = jnp.concatenate([x[:, GRAPH_R], x[:, GRAPH_NR]], axis=1).astype(jnp.float32)
    h = jnp.maximum(graph @ params['g_w1'] + params['g_b1'], 0.0)
    graph_embs = jnp.maximum(h @ params['g_w2'] + params['g_b2'], 0.0)

    flat = jnp.concatenate([post_embs, x_add, graph_embs], axis=1)
    return jnp.squeeze(_sigmoid(flat @ params['fc_w'] + params['fc_b']))


# ------------------------------- params ---------------------------------------

def init_params(key):
    ks = jax.random.split(key, 12)
    emb_body = 0.1 * jax.random.normal(ks[0], (VOCAB, EMB_SIZE), jnp.float32)
    emb = jnp.concatenate([jnp.zeros((1, EMB_SIZE), jnp.float32), emb_body], axis=0)

    conv = {}
    for i, k in enumerate(KERNEL_SIZES):
        fan_in = SEQ_LEN * k
        w = jax.random.normal(ks[1 + i], (OUT_SIZE, SEQ_LEN, k), jnp.float32) / math.sqrt(fan_in)
        b = 0.01 * jax.random.normal(ks[5 + i], (OUT_SIZE,), jnp.float32)
        conv[k] = (w, b)

    # Linear weights stored as (in, out) == torch weight transposed.
    g_w1 = jax.random.normal(ks[9], (2 * N_GRAPH, GRAPH_HID), jnp.float32) / math.sqrt(2 * N_GRAPH)
    g_b1 = jnp.zeros((GRAPH_HID,), jnp.float32)
    g_w2 = jax.random.normal(ks[10], (GRAPH_HID, GRAPH_OUT), jnp.float32) / math.sqrt(GRAPH_HID)
    g_b2 = jnp.zeros((GRAPH_OUT,), jnp.float32)

    fc_w = jax.random.normal(ks[11], (FLAT_SIZE, 1), jnp.float32) / math.sqrt(FLAT_SIZE)
    fc_b = jnp.zeros((1,), jnp.float32)
    return dict(emb=emb, conv=conv, g_w1=g_w1, g_b1=g_b1, g_w2=g_w2, g_b2=g_b2,
                fc_w=fc_w, fc_b=fc_b), FLAT_SIZE


if __name__ == "__main__":
    key = jax.random.PRNGKey(0)
    k_param, k_ids, k_feat = jax.random.split(key, 3)
    params, flattened_size = init_params(k_param)
    assert flattened_size == FLAT_SIZE
    pk = prepare_params(params)

    # x: integer-valued tag-id columns + float graph / nontext columns, as one float matrix.
    tag_ids = jax.random.randint(k_ids, (BATCH, 2 * SEQ_LEN), 0, VOCAB + 1).astype(jnp.float32)
    other = jax.random.normal(k_feat, (BATCH, 2 * N_GRAPH + N_ADD), jnp.float32)
    x = jnp.concatenate([tag_ids, other], axis=1)
    assert x.shape == (BATCH, N_FEATS)

    out = jax.block_until_ready(forward(x, pk))
    ref = jax.block_until_ready(reference_forward(x, params))
    assert out.shape == (BATCH,)
    assert jnp.allclose(out, ref, atol=2e-5, rtol=2e-5), (out, ref)
    print("KERNEL_OK")
</pallas_src>

<mosaic_0001>
module attributes {stable_mosaic.version = 11 : i64} {
  func.func @fused_kernel(%arg0: memref<4x408xf32, #tpu.memory_space<vmem>>, %arg1: memref<2x426xf32, #tpu.memory_space<vmem>>, %arg2: memref<1744x128xf32, #tpu.memory_space<vmem>>, %arg3: memref<1x128xf32, #tpu.memory_space<vmem>>, %arg4: memref<4x144xf32, #tpu.memory_space<vmem>>, %arg5: memref<16x128xf32, #tpu.memory_space<vmem>>) attributes {dimension_semantics = [], scalar_prefetch = 0 : i64, scratch_operands = 2 : i64, tpu.core_type = #tpu.core_type<tc>} {
    %c0 = arith.constant 0 : index
    %c0_0 = arith.constant 0 : index
    %0 = vector.load %arg0[%c0, %c0_0] : memref<4x408xf32, #tpu.memory_space<vmem>>, vector<4x408xf32>
    %c0_1 = arith.constant 0 : index
    %c0_2 = arith.constant 0 : index
    %1 = vector.load %arg2[%c0_1, %c0_2] : memref<1744x128xf32, #tpu.memory_space<vmem>>, vector<408x128xf32>
    %cst = arith.constant dense<0.000000e+00> : vector<4x128xf32>
    %2 = tpu.matmul %0, %1, %cst {dimension_numbers = #tpu.dot_dimension_numbers<[1], [0], [0], [1], [0, 0, 1, 1], [], []>} : vector<4x408xf32>, vector<408x128xf32>, vector<4x128xf32> -> vector<4x128xf32>
    %cst_3 = arith.constant 0.000000e+00 : f32
    %3 = vector.broadcast %cst_3 : f32 to vector<4x144xf32>
    %c0_4 = arith.constant 0 : index
    %c0_5 = arith.constant 0 : index
    %4 = vector.load %arg4[%c0_4, %c0_5] : memref<4x144xf32, #tpu.memory_space<vmem>>, vector<4x144xf32>
    tpu.vector_store %arg4[%c0_4, %c0_5], %3 {strides = array<i32>} : memref<4x144xf32, #tpu.memory_space<vmem>>, vector<4x144xf32>,
    %c0_6 = arith.constant 0 : index
    %c0_7 = arith.constant 0 : index
    %5 = vector.load %arg4[%c0_6, %c0_7] : memref<4x144xf32, #tpu.memory_space<vmem>>, vector<4x128xf32>
    tpu.vector_store %arg4[%c0_6, %c0_7], %2 {strides = array<i32>} : memref<4x144xf32, #tpu.memory_space<vmem>>, vector<4x128xf32>,
    %c0_8 = arith.constant 0 : index
    %c0_9 = arith.constant 0 : index
    %6 = vector.load %arg4[%c0_8, %c0_9] : memref<4x144xf32, #tpu.memory_space<vmem>>, vector<4x128xf32>
    %c408 = arith.constant 408 : index
    %c0_10 = arith.constant 0 : index
    %7 = vector.load %arg2[%c408, %c0_10] : memref<1744x128xf32, #tpu.memory_space<vmem>>, vector<1x128xf32>
    %8 = vector.broadcast %7 : vector<1x128xf32> to vector<4x128xf32>
    %9 = arith.mulf %6, %8 : vector<4x128xf32>
    %c0_11 = arith.constant 0 : index
    %c0_12 = arith.constant 0 : index
    %10 = vector.load %arg5[%c0_11, %c0_12] : memref<16x128xf32, #tpu.memory_space<vmem>>, vector<4x128xf32>
    tpu.vector_store %arg5[%c0_11, %c0_12], %9 {strides = array<i32>} : memref<16x128xf32, #tpu.memory_space<vmem>>, vector<4x128xf32>,
    %c0_13 = arith.constant 0 : index
    %c4 = arith.constant 4 : index
    %11 = vector.load %arg4[%c0_13, %c4] : memref<4x144xf32, #tpu.memory_space<vmem>>, vector<4x128xf32>
    %c409 = arith.constant 409 : index
    %c0_14 = arith.constant 0 : index
    %12 = vector.load %arg2[%c409, %c0_14] : memref<1744x128xf32, #tpu.memory_space<vmem>>, vector<1x128xf32>
    %13 = vector.broadcast %12 : vector<1x128xf32> to vector<4x128xf32>
    %14 = arith.mulf %11, %13 : vector<4x128xf32>
    %c4_15 = arith.constant 4 : index
    %c0_16 = arith.constant 0 : index
    %15 = vector.load %arg5[%c4_15, %c0_16] : memref<16x128xf32, #tpu.memory_space<vmem>>, vector<4x128xf32>
    tpu.vector_store %arg5[%c4_15, %c0_16], %14 {strides = array<i32>} : memref<16x128xf32, #tpu.memory_space<vmem>>, vector<4x128xf32>,
    %c0_17 = arith.constant 0 : index
    %c8 = arith.constant 8 : index
    %16 = vector.load %arg4[%c0_17, %c8] : memref<4x144xf32, #tpu.memory_space<vmem>>, vector<4x128xf32>
    %c410 = arith.constant 410 : index
    %c0_18 = arith.constant 0 : index
    %17 = vector.load %arg2[%c410, %c0_18] : memref<1744x128xf32, #tpu.memory_space<vmem>>, vector<1x128xf32>
    %18 = vector.broadcast %17 : vector<1x128xf32> to vector<4x128xf32>
    %19 = arith.mulf %16, %18 : vector<4x128xf32>
    %c8_19 = arith.constant 8 : index
    %c0_20 = arith.constant 0 : index
    %20 = vector.load %arg5[%c8_19, %c0_20] : memref<16x128xf32, #tpu.memory_space<vmem>>, vector<4x128xf32>
    tpu.vector_store %arg5[%c8_19, %c0_20], %19 {strides = array<i32>} : memref<16x128xf32, #tpu.memory_space<vmem>>, vector<4x128xf32>,
    %c0_21 = arith.constant 0 : index
    %c12 = arith.constant 12 : index
    %21 = vector.load %arg4[%c0_21, %c12] : memref<4x144xf32, #tpu.memory_space<vmem>>, vector<4x128xf32>
    %c411 = arith.constant 411 : index
    %c0_22 = arith.constant 0 : index
    %22 = vector.load %arg2[%c411, %c0_22] : memref<1744x128xf32, #tpu.memory_space<vmem>>, vector<1x128xf32>
    %23 = vector.broadcast %22 : vector<1x128xf32> to vector<4x128xf32>
    %24 = arith.mulf %21, %23 : vector<4x128xf32>
    %c12_23 = arith.constant 12 : index
    %c0_24 = arith.constant 0 : index
    %25 = vector.load %arg5[%c12_23, %c0_24] : memref<16x128xf32, #tpu.memory_space<vmem>>, vector<4x128xf32>
    tpu.vector_store %arg5[%c12_23, %c0_24], %24 {strides = array<i32>} : memref<16x128xf32, #tpu.memory_space<vmem>>, vector<4x128xf32>,
    %c0_25 = arith.constant 0 : index
    %c0_26 = arith.constant 0 : index
    %26 = vector.load %arg5[%c0_25, %c0_26] : memref<16x128xf32, #tpu.memory_space<vmem>>, vector<16x128xf32>
    %c416 = arith.constant 416 : index
    %c0_27 = arith.constant 0 : index
    %27 = vector.load %arg2[%c416, %c0_27] : memref<1744x128xf32, #tpu.memory_space<vmem>>, vector<1x128xf32>
    %cst_28 = arith.constant 0.000000e+00 : f32
    %28 = vector.broadcast %cst_28 : f32 to vector<16x128xf32>
    %c672 = arith.constant 672 : index
    %c0_29 = arith.constant 0 : index
    %29 = vector.load %arg2[%c672, %c0_29] : memref<1744x128xf32, #tpu.memory_space<vmem>>, vector<128x128xf32>
    %cst_30 = arith.constant dense<0.000000e+00> : vector<16x128xf32>
    %30 = tpu.matmul %26, %29, %cst_30 {dimension_numbers = #tpu.dot_dimension_numbers<[1], [0], [0], [1], [0, 0, 1, 1], [], []>} : vector<16x128xf32>, vector<128x128xf32>, vector<16x128xf32> -> vector<16x128xf32>
    %31 = vector.broadcast %27 : vector<1x128xf32> to vector<16x128xf32>
    %32 = arith.addf %30, %31 : vector<16x128xf32>
    %cst_31 = arith.constant 0.000000e+00 : f32
    %33 = vector.broadcast %cst_31 : f32 to vector<16x128xf32>
    %34 = arith.maximumf %32, %33 : vector<16x128xf32>
    %c800 = arith.constant 800 : index
    %c0_32 = arith.constant 0 : index
    %35 = vector.load %arg2[%c800, %c0_32] : memref<1744x128xf32, #tpu.memory_space<vmem>>, vector<128x128xf32>
    %cst_33 = arith.constant dense<0.000000e+00> : vector<16x128xf32>
    %36 = tpu.matmul %26, %35, %cst_33 {dimension_numbers = #tpu.dot_dimension_numbers<[1], [0], [0], [1], [0, 0, 1, 1], [], []>} : vector<16x128xf32>, vector<128x128xf32>, vector<16x128xf32> -> vector<16x128xf32>
    %37 = vector.broadcast %27 : vector<1x128xf32> to vector<16x128xf32>
    %38 = arith.addf %36, %37 : vector<16x128xf32>
    %cst_34 = arith.constant 0.000000e+00 : f32
    %39 = vector.broadcast %cst_34 : f32 to vector<16x128xf32>
    %40 = arith.maximumf %38, %39 : vector<16x128xf32>
    %41 = arith.maximumf %34, %40 : vector<16x128xf32>
    %c568 = arith.constant 568 : index
    %c0_35 = arith.constant 0 : index
    %42 = vector.load %arg2[%c568, %c0_35] : memref<1744x128xf32, #tpu.memory_space<vmem>>, vector<16x128xf32>
    %43 = arith.mulf %41, %42 : vector<16x128xf32>
    %44 = arith.addf %28, %43 : vector<16x128xf32>
    %c928 = arith.constant 928 : index
    %c0_36 = arith.constant 0 : index
    %45 = vector.load %arg2[%c928, %c0_36] : memref<1744x128xf32, #tpu.memory_space<vmem>>, vector<128x128xf32>
    %cst_37 = arith.constant dense<0.000000e+00> : vector<16x128xf32>
    %46 = tpu.matmul %26, %45, %cst_37 {dimension_numbers = #tpu.dot_dimension_numbers<[1], [0], [0], [1], [0, 0, 1, 1], [], []>} : vector<16x128xf32>, vector<128x128xf32>, vector<16x128xf32> -> vector<16x128xf32>
    %47 = vector.broadcast %27 : vector<1x128xf32> to vector<16x128xf32>
    %48 = arith.addf %46, %47 : vector<16x128xf32>
    %cst_38 = arith.constant 0.000000e+00 : f32
    %49 = vector.broadcast %cst_38 : f32 to vector<16x128xf32>
    %50 = arith.maximumf %48, %49 : vector<16x128xf32>
    %51 = arith.maximumf %41, %50 : vector<16x128xf32>
    %c584 = arith.constant 584 : index
    %c0_39 = arith.constant 0 : index
    %52 = vector.load %arg2[%c584, %c0_39] : memref<1744x128xf32, #tpu.memory_space<vmem>>, vector<16x128xf32>
    %53 = arith.mulf %51, %52 : vector<16x128xf32>
    %54 = arith.addf %44, %53 : vector<16x128xf32>
    %c1056 = arith.constant 1056 : index
    %c0_40 = arith.constant 0 : index
    %55 = vector.load %arg2[%c1056, %c0_40] : memref<1744x128xf32, #tpu.memory_space<vmem>>, vector<128x128xf32>
    %cst_41 = arith.constant dense<0.000000e+00> : vector<16x128xf32>
    %56 = tpu.matmul %26, %55, %cst_41 {dimension_numbers = #tpu.dot_dimension_numbers<[1], [0], [0], [1], [0, 0, 1, 1], [], []>} : vector<16x128xf32>, vector<128x128xf32>, vector<16x128xf32> -> vector<16x128xf32>
    %57 = vector.broadcast %27 : vector<1x128xf32> to vector<16x128xf32>
    %58 = arith.addf %56, %57 : vector<16x128xf32>
    %cst_42 = arith.constant 0.000000e+00 : f32
    %59 = vector.broadcast %cst_42 : f32 to vector<16x128xf32>
    %60 = arith.maximumf %58, %59 : vector<16x128xf32>
    %61 = arith.maximumf %51, %60 : vector<16x128xf32>
    %c600 = arith.constant 600 : index
    %c0_43 = arith.constant 0 : index
    %62 = vector.load %arg2[%c600, %c0_43] : memref<1744x128xf32, #tpu.memory_space<vmem>>, vector<16x128xf32>
    %63 = arith.mulf %61, %62 : vector<16x128xf32>
    %64 = arith.addf %54, %63 : vector<16x128xf32>
    %c1184 = arith.constant 1184 : index
    %c0_44 = arith.constant 0 : index
    %65 = vector.load %arg2[%c1184, %c0_44] : memref<1744x128xf32, #tpu.memory_space<vmem>>, vector<128x128xf32>
    %cst_45 = arith.constant dense<0.000000e+00> : vector<16x128xf32>
    %66 = tpu.matmul %26, %65, %cst_45 {dimension_numbers = #tpu.dot_dimension_numbers<[1], [0], [0], [1], [0, 0, 1, 1], [], []>} : vector<16x128xf32>, vector<128x128xf32>, vector<16x128xf32> -> vector<16x128xf32>
    %67 = vector.broadcast %27 : vector<1x128xf32> to vector<16x128xf32>
    %68 = arith.addf %66, %67 : vector<16x128xf32>
    %cst_46 = arith.constant 0.000000e+00 : f32
    %69 = vector.broadcast %cst_46 : f32 to vector<16x128xf32>
    %70 = arith.maximumf %68, %69 : vector<16x128xf32>
    %71 = arith.maximumf %61, %70 : vector<16x128xf32>
    %c616 = arith.constant 616 : index
    %c0_47 = arith.constant 0 : index
    %72 = vector.load %arg2[%c616, %c0_47] : memref<1744x128xf32, #tpu.memory_space<vmem>>, vector<16x128xf32>
    %73 = arith.mulf %71, %72 : vector<16x128xf32>
    %74 = arith.addf %64, %73 : vector<16x128xf32>
    %c632 = arith.constant 632 : index
    %c0_48 = arith.constant 0 : index
    %75 = vector.load %arg2[%c632, %c0_48] : memref<1744x128xf32, #tpu.memory_space<vmem>>, vector<2x16xf32>
    %cst_49 = arith.constant dense<0.000000e+00> : vector<2x128xf32>
    %76 = tpu.matmul %75, %74, %cst_49 {dimension_numbers = #tpu.dot_dimension_numbers<[1], [0], [0], [1], [0, 0, 1, 1], [], []>} : vector<2x16xf32>, vector<16x128xf32>, vector<2x128xf32> -> vector<2x128xf32>
    %cst_50 = arith.constant dense<0.000000e+00> : vector<2xf32>
    %77 = vector.multi_reduction <add>, %76, %cst_50 [1] : vector<2x128xf32> to vector<2xf32>
    %78 = vector.shape_cast %77 : vector<2xf32> to vector<2x1xf32>
    %c0_51 = arith.constant 0 : index
    %c0_52 = arith.constant 0 : index
    %79 = vector.load %arg1[%c0_51, %c0_52] : memref<2x426xf32, #tpu.memory_space<vmem>>, vector<2x426xf32>
    %c1312 = arith.constant 1312 : index
    %c0_53 = arith.constant 0 : index
    %80 = vector.load %arg2[%c1312, %c0_53] : memref<1744x128xf32, #tpu.memory_space<vmem>>, vector<426x128xf32>
    %cst_54 = arith.constant dense<0.000000e+00> : vector<2x128xf32>
    %81 = tpu.matmul %79, %80, %cst_54 {dimension_numbers = #tpu.dot_dimension_numbers<[1], [0], [0], [1], [0, 0, 1, 1], [], []>} : vector<2x426xf32>, vector<426x128xf32>, vector<2x128xf32> -> vector<2x128xf32>
    %c424 = arith.constant 424 : index
    %c0_55 = arith.constant 0 : index
    %82 = vector.load %arg2[%c424, %c0_55] : memref<1744x128xf32, #tpu.memory_space<vmem>>, vector<1x128xf32>
    %83 = vector.broadcast %82 : vector<1x128xf32> to vector<2x128xf32>
    %84 = arith.addf %81, %83 : vector<2x128xf32>
    %cst_56 = arith.constant 0.000000e+00 : f32
    %85 = vector.broadcast %cst_56 : f32 to vector<2x128xf32>
    %86 = arith.maximumf %84, %85 : vector<2x128xf32>
    %c432 = arith.constant 432 : index
    %c0_57 = arith.constant 0 : index
    %87 = vector.load %arg2[%c432, %c0_57] : memref<1744x128xf32, #tpu.memory_space<vmem>>, vector<128x128xf32>
    %cst_58 = arith.constant dense<0.000000e+00> : vector<2x128xf32>
    %88 = tpu.matmul %86, %87, %cst_58 {dimension_numbers = #tpu.dot_dimension_numbers<[1], [0], [0], [1], [0, 0, 1, 1], [], []>} : vector<2x128xf32>, vector<128x128xf32>, vector<2x128xf32> -> vector<2x128xf32>
    %c560 = arith.constant 560 : index
    %c0_59 = arith.constant 0 : index
    %89 = vector.load %arg2[%c560, %c0_59] : memref<1744x128xf32, #tpu.memory_space<vmem>>, vector<1x128xf32>
    %90 = vector.broadcast %89 : vector<1x128xf32> to vector<2x128xf32>
    %91 = arith.addf %88, %90 : vector<2x128xf32>
    %cst_60 = arith.constant 0.000000e+00 : f32
    %92 = vector.broadcast %cst_60 : f32 to vector<2x128xf32>
    %93 = arith.maximumf %91, %92 : vector<2x128xf32>
    %c640 = arith.constant 640 : index
    %c0_61 = arith.constant 0 : index
    %94 = vector.load %arg2[%c640, %c0_61] : memref<1744x128xf32, #tpu.memory_space<vmem>>, vector<1x128xf32>
    %95 = vector.broadcast %94 : vector<1x128xf32> to vector<2x128xf32>
    %96 = arith.mulf %93, %95 : vector<2x128xf32>
    %cst_62 = arith.constant dense<0.000000e+00> : vector<2xf32>
    %97 = vector.multi_reduction <add>, %96, %cst_62 [1] : vector<2x128xf32> to vector<2xf32>
    %98 = vector.shape_cast %97 : vector<2xf32> to vector<2x1xf32>
    %c0_63 = arith.constant 0 : index
    %c416_64 = arith.constant 416 : index
    %99 = vector.load %arg1[%c0_63, %c416_64] : memref<2x426xf32, #tpu.memory_space<vmem>>, vector<2x10xf32>
    %c664 = arith.constant 664 : index
    %c0_65 = arith.constant 0 : index
    %100 = vector.load %arg2[%c664, %c0_65] : memref<1744x128xf32, #tpu.memory_space<vmem>>, vector<1x10xf32>
    %101 = vector.broadcast %100 : vector<1x10xf32> to vector<2x10xf32>
    %102 = arith.mulf %99, %101 : vector<2x10xf32>
    %cst_66 = arith.constant dense<0.000000e+00> : vector<2xf32>
    %103 = vector.multi_reduction <add>, %102, %cst_66 [1] : vector<2x10xf32> to vector<2xf32>
    %104 = vector.shape_cast %103 : vector<2xf32> to vector<2x1xf32>
    %105 = arith.addf %78, %98 : vector<2x1xf32>
    %106 = arith.addf %105, %104 : vector<2x1xf32>
    %c648 = arith.constant 648 : index
    %c0_67 = arith.constant 0 : index
    %107 = vector.load %arg2[%c648, %c0_67] : memref<1744x128xf32, #tpu.memory_space<vmem>>, vector<1x1xf32>
    %108 = vector.broadcast %107 : vector<1x1xf32> to vector<2x1xf32>
    %109 = arith.addf %106, %108 : vector<2x1xf32>
    %cst_68 = arith.constant 0.000000e+00 : f32
    %110 = vector.broadcast %cst_68 : f32 to vector<2x1xf32>
    %111 = arith.subf %110, %109 : vector<2x1xf32>
    %112 = math.exp %111 : vector<2x1xf32>
    %cst_69 = arith.constant 1.000000e+00 : f32
    %113 = vector.broadcast %cst_69 : f32 to vector<2x1xf32>
    %114 = arith.addf %113, %112 : vector<2x1xf32>
    %cst_70 = arith.constant 1.000000e+00 : f32
    %115 = vector.broadcast %cst_70 : f32 to vector<2x1xf32>
    %116 = arith.divf %115, %114 : vector<2x1xf32>
    %c656 = arith.constant 656 : index
    %c0_71 = arith.constant 0 : index
    %117 = vector.load %arg2[%c656, %c0_71] : memref<1744x128xf32, #tpu.memory_space<vmem>>, vector<2x128xf32>
    %118 = vector.broadcast %116 : vector<2x1xf32> to vector<2x128xf32>
    %119 = arith.mulf %118, %117 : vector<2x128xf32>
    %cst_72 = arith.constant dense<0.000000e+00> : vector<128xf32>
    %120 = vector.multi_reduction <add>, %119, %cst_72 [0] : vector<2x128xf32> to vector<128xf32>
    %121 = vector.shape_cast %120 : vector<128xf32> to vector<1x128xf32>
    %c0_73 = arith.constant 0 : index
    %c0_74 = arith.constant 0 : index
    %122 = vector.load %arg3[%c0_73, %c0_74] : memref<1x128xf32, #tpu.memory_space<vmem>>, vector<1x128xf32>
    tpu.vector_store %arg3[%c0_73, %c0_74], %121 {strides = array<i32>} : memref<1x128xf32, #tpu.memory_space<vmem>>, vector<1x128xf32>,
    return
  }
}

</mosaic_0001>

<bundles_post_ra>
// kernel: forward.1
= control target key start
LH: loop header
LB: loop body
LE: loop exit
PB: predicated region body
PF: predicated region fallthrough
CT: control target
= control target key end

     0   :  { %8 = vsyncpa [#allocation5], 0  ;;  %s2065_s12 = smov [#allocation4]   ;;  %s2201_s0 = inlined_call_operand.vmem [shape: f32[4,408], index: 0, kind: input, shape index: {}]   ;;  %s2202_s1 = inlined_call_operand.vmem [shape: f32[2,426], index: 1, kind: input, shape index: {}]   ;;  %s2203_s2 = inlined_call_operand.hbm [shape: f32[1744,128], index: 2, kind: input, shape index: {}]   ;;  %s2204_s3 = inlined_call_operand.vmem [shape: f32[1,128], index: 3, kind: output, shape index: {}]  }
   0x1   :  { %s18_s13 = sshll.u32 %s2065_s12, 4  ;;  %s2041_s16 = scalar_lea.hbm %s2203_s2, 27904  ;;  %s19_s13 = int_to_ptr.vmem [resolvable:$true] %s18_s13 }
   0x2   :  { %p2042_p0 = scmp.ne.s32.totalorder %s2203_s2, %s2041_s16  ;;  %p2045_p1 = scmp.lt.u32.totalorder %s2041_s16, %s2203_s2 }
   0x4   :  { %p2047_p2 = pnand %p2045_p1, %p2042_p0 }
   0x6   :  { %2050 = shalt.err (!%p2047_p2)
}
   0x7   :  { %s2051_s21 = scalar_lea.vmem %s19_s13, 27904  ;;  %p2056_p4 = scmp.lt.s32.totalorder %s19_s13, %s19_s13 }
   0x8   :  { %p2052_p3 = scmp.ne.s32.totalorder %s19_s13, %s2051_s21  ;;  %p2057_p5 = scmp.lt.s32.totalorder %s2051_s21, %s2051_s21 }
   0xa   :  { %p2058_p6 = por %p2057_p5, %p2056_p4 }
   0xc   :  { %p2059_p7 = pnand %p2058_p6, %p2052_p3 }
   0xe   :  { %2062 = shalt.err (!%p2059_p7)
}
   0xf   :  { %s2066_s22 = smov 128   ;;  %s2067_s23 = smov 8  }
  0x10   :  { %24 = dma.hbm_to_vmem [thread:$0]  %s2203_s2, 27904, %s19_s13, [#allocation5], %s2066_s22, %s2066_s22, %s2067_s23  }
  0x11   :  { %2063 = dma.done.wait [#allocation5], 27904  }
  0x12   :  { %2064 = vsyncadd [#allocation5], 4294939392  ;;  %vm229_vm0 = vcmask 1043456   ;;  %vm230_vm1 = vcmask 130052   ;;  %v2068_v0 = vmov 0.0|0.0   ;;  %v2069_v1 = vmov 0.0  }
  0x13   :  { %1736 = vmatprep.subr.bf16.mxu1 %v2068_v0  ;;  %vm231_vm2 = vmor %vm230_vm1, %vm229_vm0  ;;  %v62_v2 = vld [vmem:[#allocation4 + $0x100] sm:$0xff]  ;;  %v63_v3 = vld [vmem:[#allocation4 + $0x108] sm:$0xff]  ;;  %vm86_vm3 = vcmask 195584   ;;  %s2070_s29 = smov 4   ;;  %vm252_vm4 = vcmask 31744   ;;  %vm276_vm5 = vcmask 64512  }
  0x14   :  { %232 = vst.msk [vmem:[#allocation2] sm:$0xff] %vm231_vm2, %v2069_v1  ;;  %v46_v4 = vld [vmem:[#allocation4 + $0x80] sm:$0xff]  ;;  %v1737_v5 = vpack.c.bf16 %v63_v3, %v62_v2  ;;  %v47_v6 = vld [vmem:[#allocation4 + $0x88] sm:$0xff]  ;;  %v64_v11 = vld [vmem:[#allocation4 + $0x110] sm:$0xff]  ;;  %vm300_vm6 = vcmask 97280   ;;  %s2072_s30 = smov 124  }
  0x15   :  { %v30_v7 = vld [vmem:[#allocation4] sm:$0xff]  ;;  %v31_v8 = vld [vmem:[#allocation4 + $0x8] sm:$0xff]  ;;  %v1704_v9 = vpack.c.bf16 %v47_v6, %v46_v4  ;;  %v65_v12 = vld [vmem:[#allocation4 + $0x118] sm:$0xff]  ;;  %s2073_s4 = smov 120   ;;  %s2074_s5 = smov 116   ;;  %vm262_vm7 = vcmask 1014784  }
  0x16   :  { %v1706_v10 = vpack.c.bf16 %v31_v8, %v30_v7  ;;  %v48_v13 = vld [vmem:[#allocation4 + $0x90] sm:$0xff]  ;;  %1738 = vmatpush1.bf16.msra.mxu1 %v1737_v5  ;;  %v1740_v14 = vpack.c.bf16 %v65_v12, %v64_v11  ;;  %v49_v15 = vld [vmem:[#allocation4 + $0x98] sm:$0xff]  ;;  %v66_v19 = vld [vmem:[#allocation4 + $0x120] sm:$0xff]  ;;  %vm286_vm8 = vcmask 982016   ;;  %vm310_vm9 = vcmask 949248   ;;  %s2078_s8 = smov 32  }
  0x17   :  { %v32_v16 = vld [vmem:[#allocation4 + $0x10] sm:$0xff]  ;;  %v33_v17 = vld [vmem:[#allocation4 + $0x18] sm:$0xff]  ;;  %1705 = vmatprep.subr.bf16.mxu0 %v1704_v9  ;;  %1739 = vmatprep.subr.bf16.mxu1 %v2068_v0  ;;  %v1708_v18 = vpack.c.bf16 %v49_v15, %v48_v13  ;;  %v67_v20 = vld [vmem:[#allocation4 + $0x128] sm:$0xff]  ;;  %vm2075_vm10 = vmmov 0   ;;  %vm893_vm11 = vcmask 1041408   ;;  %vm2077_vm12 = vmmov 1  }
  0x18   :  { %v50_v21 = vld [vmem:[#allocation4 + $0xa0] sm:$0xff]  ;;  %1707 = vmatpush3.bf16.msra.mxu0 %v1706_v10  ;;  %v1710_v22 = vpack.c.bf16 %v33_v17, %v32_v16  ;;  %v51_v23 = vld [vmem:[#allocation4 + $0xa8] sm:$0xff]  ;;  %v1743_v27 = vpack.c.bf16 %v67_v20, %v66_v19  ;;  %v52_v28 = vld [vmem:[#allocation4 + $0xb0] sm:$0xff]  ;;  %vm978_vm14 = vcmask 343040   ;;  %vm819_vm15 = vcmask 130048   ;;  %s2079_s11 = smov 96  }
  0x19   :  { %1709 = vmatprep.subr.bf16.mxu0 %v1708_v18  ;;  %v1712_v24 = vpack.c.bf16 %v51_v23, %v50_v21  ;;  %v34_v25 = vld [vmem:[#allocation4 + $0x20] sm:$0xff]  ;;  %v35_v26 = vld [vmem:[#allocation4 + $0x28] sm:$0xff]  ;;  %v53_v29 = vld [vmem:[#allocation4 + $0xb8] sm:$0xff]  ;;  %vm1255_vm0 = vcmask 74752  }
  0x1a   :  { %1741 = vmatpush1.bf16.msra.mxu1 %v1740_v14  ;;  %v68_v30 = vld [vmem:[#allocation4 + $0x130] sm:$0xff]  ;;  %v69_v31 = vld [vmem:[#allocation4 + $0x138] sm:$0xff]  ;;  %v1714_v32 = vpack.c.bf16 %v35_v26, %v34_v25  ;;  %v1716_v33 = vpack.c.bf16 %v53_v29, %v52_v28  ;;  %v54_v37 = vld [vmem:[#allocation4 + $0xc0] sm:$0xff] }
  0x1b   :  { %1742 = vmatprep.subr.bf16.mxu1 %v2068_v0  ;;  %v36_v34 = vld [vmem:[#allocation4 + $0x30] sm:$0xff]  ;;  %v37_v35 = vld [vmem:[#allocation4 + $0x38] sm:$0xff]  ;;  %v1746_v36 = vpack.c.bf16 %v69_v31, %v68_v30  ;;  %v55_v38 = vld [vmem:[#allocation4 + $0xc8] sm:$0xff] }
  0x1c   :  { %1711 = vmatpush3.bf16.msra.mxu0 %v1710_v22  ;;  %v70_v39 = vld [vmem:[#allocation4 + $0x140] sm:$0xff]  ;;  %v71_v40 = vld [vmem:[#allocation4 + $0x148] sm:$0xff]  ;;  %v1718_v41 = vpack.c.bf16 %v37_v35, %v36_v34  ;;  %v1720_v42 = vpack.c.bf16 %v55_v38, %v54_v37  ;;  %v56_v46 = vld [vmem:[#allocation4 + $0xd0] sm:$0xff] }
  0x1d   :  { %1713 = vmatprep.subr.bf16.mxu0 %v1712_v24  ;;  %v38_v43 = vld [vmem:[#allocation4 + $0x40] sm:$0xff]  ;;  %v39_v44 = vld [vmem:[#allocation4 + $0x48] sm:$0xff]  ;;  %v1749_v45 = vpack.c.bf16 %v71_v40, %v70_v39  ;;  %v57_v47 = vld [vmem:[#allocation4 + $0xd8] sm:$0xff] }
  0x1e   :  { %1744 = vmatpush1.bf16.msra.mxu1 %v1743_v27  ;;  %v72_v48 = vld [vmem:[#allocation4 + $0x150] sm:$0xff]  ;;  %v73_v49 = vld [vmem:[#allocation4 + $0x158] sm:$0xff]  ;;  %v28_v50 = vld [vmem:[%s2201_s0] sm:$0xff]  ;;  %v1722_v51 = vpack.c.bf16 %v39_v44, %v38_v43  ;;  %v1724_v55 = vpack.c.bf16 %v57_v47, %v56_v46 }
  0x1f   :  { %1745 = vmatprep.subr.bf16.mxu1 %v2068_v0  ;;  %v83_v52 = vcombine.high %v28_v50, %v28_v50  ;;  %v29_v53 = vld [vmem:[%s2201_s0 + $0x8] sm:$0xff]  ;;  %v1295_v54 = vld [vmem:[#allocation4 + $0x199] ss:$0 sm:$0xff]  ;;  %v1297_v59 = vld [vmem:[#allocation4 + $0x19b] ss:$0 sm:$0xff]  ;;  %v1752_v60 = vpack.c.bf16 %v73_v49, %v72_v48  ;;  %s2071_s0 = smov 12  }
  0x20   :  { %1715 = vmatpush3.bf16.msra.mxu0 %v1714_v32  ;;  %v40_v56 = vld [vmem:[#allocation4 + $0x50] sm:$0xff]  ;;  %v41_v57 = vld [vmem:[#allocation4 + $0x58] sm:$0xff]  ;;  %v84_v58 = vcombine.high %v29_v53, %v29_v53  ;;  %249 = vrot.lane.b32.xlu0 %v1295_v54, %s2070_s29  ;;  %v58_v61 = vld [vmem:[#allocation4 + $0xe0] sm:$0xff] }
  0x21   :  { %1717 = vmatprep.subr.bf16.mxu0 %v1716_v33  ;;  %v59_v62 = vld [vmem:[#allocation4 + $0xe8] sm:$0xff]  ;;  %153 = vmatprep.mubr.f32.mxu0 %v83_v52  ;;  %v1296_v63 = vld [vmem:[#allocation4 + $0x19a] ss:$0 sm:$0xff]  ;;  %v74_v2 = vld [vmem:[#allocation4 + $0x160] sm:$0xff]  ;;  %v1726_v4 = vpack.c.bf16 %v41_v57, %v40_v56 }
  0x22   :  { %1747 = vmatpush1.bf16.msra.mxu1 %v1746_v36  ;;  %v75_v3 = vld [vmem:[#allocation4 + $0x168] sm:$0xff]  ;;  %1293 = vmatprep.mubr.msk.f32.mxu1 %vm86_vm3, %v84_v58  ;;  %v1728_v5 = vpack.c.bf16 %v59_v62, %v58_v61  ;;  %v42_v6 = vld [vmem:[#allocation4 + $0x60] sm:$0xff]  ;;  %v60_v9 = vld [vmem:[#allocation4 + $0xf0] sm:$0xff] }
  0x23   :  { %1748 = vmatprep.subr.bf16.mxu1 %v2068_v0  ;;  %297 = vrot.lane.b32.xlu1 %v1297_v59, %s2071_s0  ;;  %v43_v7 = vld [vmem:[#allocation4 + $0x68] sm:$0xff]  ;;  %v1755_v8 = vpack.c.bf16 %v75_v3, %v74_v2  ;;  %v61_v10 = vld [vmem:[#allocation4 + $0xf8] sm:$0xff]  ;;  %v76_v11 = vld [vmem:[#allocation4 + $0x170] sm:$0xff] }
  0x24   :  { %1719 = vmatpush3.bf16.msra.mxu0 %v1718_v41  ;;  %273 = vrot.lane.b32.xlu0 %v1296_v63, %s2067_s23  ;;  %v77_v12 = vld [vmem:[#allocation4 + $0x178] sm:$0xff]  ;;  %v1730_v13 = vpack.c.bf16 %v43_v7, %v42_v6  ;;  %v1732_v14 = vpack.c.bf16 %v61_v10, %v60_v9  ;;  %v44_v15 = vld [vmem:[#allocation4 + $0x70] sm:$0xff]  ;;  %v78_v18 = vld [vmem:[#allocation4 + $0x180] sm:$0xff] }
  0x25   :  { %1721 = vmatprep.subr.bf16.mxu0 %v1720_v42  ;;  %v45_v16 = vld [vmem:[#allocation4 + $0x78] sm:$0xff]  ;;  %v1758_v17 = vpack.c.bf16 %v77_v12, %v76_v11  ;;  %v79_v19 = vld [vmem:[#allocation4 + $0x188] sm:$0xff]  ;;  %v80_v22 = vld [vmem:[#allocation4 + $0x190] sm:$0xff] }
  0x26   :  { %1750 = vmatpush1.bf16.msra.mxu1 %v1749_v45  ;;  %v1734_v20 = vpack.c.bf16 %v45_v16, %v44_v15  ;;  %v1761_v21 = vpack.c.bf16 %v79_v19, %v78_v18  ;;  %v317_v23 = vld [vmem:[#allocation4 + $0x2a0] sm:$0xff]  ;;  %v318_v24 = vld [vmem:[#allocation4 + $0x2a8] sm:$0xff]  ;;  %v319_v28 = vld [vmem:[#allocation4 + $0x2b0] sm:$0xff] }
  0x27   :  { %1751 = vmatprep.subr.bf16.mxu1 %v2068_v0  ;;  %v414_v25 = vld [vmem:[#allocation4 + $0x320] sm:$0xff]  ;;  %v1763_v26 = vpack.c.bf16 %v318_v24, %v317_v23  ;;  %v415_v27 = vld [vmem:[#allocation4 + $0x328] sm:$0xff]  ;;  %v320_v29 = vld [vmem:[#allocation4 + $0x2b8] sm:$0xff] }
  0x28   :  { %1723 = vmatpush3.bf16.msra.mxu0 %v1722_v51  ;;  %v1795_v30 = vpack.c.bf16 %v415_v27, %v414_v25  ;;  %v1767_v31 = vpack.c.bf16 %v320_v29, %v319_v28  ;;  %v416_v32 = vld [vmem:[#allocation4 + $0x330] sm:$0xff]  ;;  %v417_v33 = vld [vmem:[#allocation4 + $0x338] sm:$0xff]  ;;  %v321_v34 = vld [vmem:[#allocation4 + $0x2c0] sm:$0xff] }
  0x29   :  { %1725 = vmatprep.subr.bf16.mxu0 %v1724_v55  ;;  %v1799_v35 = vpack.c.bf16 %v417_v33, %v416_v32  ;;  %v322_v36 = vld [vmem:[#allocation4 + $0x2c8] sm:$0xff]  ;;  %v418_v37 = vld [vmem:[#allocation4 + $0x340] sm:$0xff]  ;;  %v323_v41 = vld [vmem:[#allocation4 + $0x2d0] sm:$0xff] }
  0x2a   :  { %1753 = vmatpush1.bf16.msra.mxu1 %v1752_v60  ;;  %v419_v38 = vld [vmem:[#allocation4 + $0x348] sm:$0xff]  ;;  %v1771_v39 = vpack.c.bf16 %v322_v36, %v321_v34  ;;  %v324_v42 = vld [vmem:[#allocation4 + $0x2d8] sm:$0xff]  ;;  %v420_v43 = vld [vmem:[#allocation4 + $0x350] sm:$0xff] }
  0x2b   :  { %1754 = vmatprep.subr.bf16.mxu1 %v2068_v0  ;;  %v1803_v40 = vpack.c.bf16 %v419_v38, %v418_v37  ;;  %v421_v44 = vld [vmem:[#allocation4 + $0x358] sm:$0xff]  ;;  %v1775_v45 = vpack.c.bf16 %v324_v42, %v323_v41  ;;  %v325_v51 = vld [vmem:[#allocation4 + $0x2e0] sm:$0xff]  ;;  %v326_v52 = vld [vmem:[#allocation4 + $0x2e8] sm:$0xff] }
  0x2c   :  { %1727 = vmatpush3.bf16.msra.mxu0 %v1726_v4  ;;  %v1807_v46 = vpack.c.bf16 %v421_v44, %v420_v43  ;;  %v1779_v55 = vpack.c.bf16 %v326_v52, %v325_v51  ;;  %v423_v56 = vld [vmem:[#allocation4 + $0x368] sm:$0xff]  ;;  %v327_v61 = vld [vmem:[#allocation4 + $0x2f0] sm:$0xff]  ;;  %v328_v62 = vld [vmem:[#allocation4 + $0x2f8] sm:$0xff] }
  0x2d   :  { %1729 = vmatprep.subr.bf16.mxu0 %v1728_v5  ;;  %v424_v63 = vld [vmem:[#allocation4 + $0x370] sm:$0xff]  ;;  %v1783_v2 = vpack.c.bf16 %v328_v62, %v327_v61  ;;  %v425_v3 = vld [vmem:[#allocation4 + $0x378] sm:$0xff]  ;;  %v330_v9 = vld [vmem:[#allocation4 + $0x308] sm:$0xff] }
  0x2e   :  { %1756 = vmatpush1.bf16.msra.mxu1 %v1755_v8  ;;  %v1815_v4 = vpack.c.bf16 %v425_v3, %v424_v63  ;;  %v329_v8 = vld [vmem:[#allocation4 + $0x300] sm:$0xff]  ;;  %v1294_v11 = vld [vmem:[#allocation4 + $0x198] ss:$0 sm:$0xff]  ;;  %v428_v24 = vld [vmem:[#allocation4 + $0x390] sm:$0xff] }
  0x2f   :  { %1757 = vmatprep.subr.bf16.mxu1 %v2068_v0  ;;  %v426_v10 = vld [vmem:[#allocation4 + $0x380] sm:$0xff]  ;;  %v1787_v12 = vpack.c.bf16 %v330_v9, %v329_v8  ;;  %v332_v23 = vld [vmem:[#allocation4 + $0x318] sm:$0xff]  ;;  %v516_v28 = vld [vmem:[#allocation4 + $0x3a8] sm:$0xff] }
  0x30   :  { %1731 = vmatpush3.bf16.msra.mxu0 %v1730_v13  ;;  %v427_v13 = vld [vmem:[#allocation4 + $0x388] sm:$0xff]  ;;  %v515_v27 = vld [vmem:[#allocation4 + $0x3a0] sm:$0xff]  ;;  %v518_v51 = vld [vmem:[#allocation4 + $0x3b8] sm:$0xff] }
  0x31   :  { %1733 = vmatprep.subr.bf16.mxu0 %v1732_v14  ;;  %v1819_v14 = vpack.c.bf16 %v427_v13, %v426_v10  ;;  %v616_v32 = vld [vmem:[#allocation4 + $0x420] sm:$0xff]  ;;  %v617_v33 = vld [vmem:[#allocation4 + $0x428] sm:$0xff]  ;;  %v618_v52 = vld [vmem:[#allocation4 + $0x430] sm:$0xff] }
  0x32   :  { %1759 = vmatpush1.bf16.msra.mxu1 %v1758_v17  ;;  %v1859_v36 = vpack.c.bf16 %v617_v33, %v616_v32  ;;  %v521_v63 = vld [vmem:[#allocation4 + $0x3d0] sm:$0xff]  ;;  %v524_v8 = vld [vmem:[#allocation4 + $0x3e8] sm:$0xff]  ;;  %v624_v9 = vld [vmem:[#allocation4 + $0x460] sm:$0xff] }
  0x33   :  { %1760 = vmatprep.subr.bf16.mxu1 %v2068_v0  ;;  %v622_v3 = vld [vmem:[#allocation4 + $0x450] sm:$0xff]  ;;  %v625_v10 = vld [vmem:[#allocation4 + $0x468] sm:$0xff]  ;;  %vm1990_vm13 = vmpackc.low %vm893_vm11, %vm2077_vm12 }
  0x34   :  { %1735 = vmatpush3.bf16.msra.mxu0 %v1734_v20  ;;  %v525_v13 = vld [vmem:[#allocation4 + $0x3f0] sm:$0xff]  ;;  %v718_v32 = vld [vmem:[#allocation4 + $0x4a8] sm:$0xff] }
  0x35   :  { %1764 = vmatprep.subr.bf16.mxu0 %v1763_v26 }
  0x36   :  { %1762 = vmatpush1.bf16.msra.mxu1 %v1761_v21 }
  0x37   :  { %154 = vmatmul.mubr.f32.vlgmr.msra.gmra.mrb[0].mxu0 %v28_v50  ;;  %195 = vmatprep.subr.mxu1 %v2069_v1 }
  0x38   :  { %1766 = vmatpush3.bf16.msra.mxu0 %v1763_v26  ;;  %v429_v26 = vld [vmem:[#allocation4 + $0x398] sm:$0xff] }
  0x39   :  { %1768 = vmatprep.subr.bf16.mxu0 %v1767_v31 }
  0x3a   :  { %196 = vmatpush1.msra.mxu1 %v80_v22  ;;  %v331_v22 = vld [vmem:[#allocation4 + $0x310] sm:$0xff] }
  0x3b   :  { %224 = vmatmul.mubr.f32.vlgmr.msra.gmra.mrb[0].mxu1 %v29_v53  ;;  %1796 = vmatprep.subr.bf16.mxu1 %v1795_v30  ;;  %v422_v53 = vld [vmem:[#allocation4 + $0x360] sm:$0xff]  ;;  %v1791_v25 = vpack.c.bf16 %v332_v23, %v331_v22  ;;  %v629_v22 = vld [vmem:[#allocation4 + $0x488] sm:$0xff] }
  0x3c   :  { %1798 = vmatpush3.bf16.msra.mxu1 %v1795_v30  ;;  %1770 = vmatpush3.bf16.msra.mxu0 %v1767_v31  ;;  %v1811_v59 = vpack.c.bf16 %v423_v56, %v422_v53  ;;  %v1823_v31 = vpack.c.bf16 %v429_v26, %v428_v24  ;;  %v619_v53 = vld [vmem:[#allocation4 + $0x438] sm:$0xff] }
  0x3d   :  { %1800 = vmatprep.subr.bf16.mxu1 %v1799_v35  ;;  %1772 = vmatprep.subr.bf16.mxu0 %v1771_v39  ;;  %v530_v26 = vld [vmem:[#allocation4 + $0x418] sm:$0xff] }
  0x40   :  { %1802 = vmatpush3.bf16.msra.mxu1 %v1799_v35  ;;  %1774 = vmatpush3.bf16.msra.mxu0 %v1771_v39  ;;  %v1827_v35 = vpack.c.bf16 %v516_v28, %v515_v27  ;;  %v630_v27 = vld [vmem:[#allocation4 + $0x490] sm:$0xff]  ;;  %v631_v28 = vld [vmem:[#allocation4 + $0x498] sm:$0xff] }
  0x41   :  { %1804 = vmatprep.subr.bf16.mxu1 %v1803_v40  ;;  %1776 = vmatprep.subr.bf16.mxu0 %v1775_v45 }
  0x44   :  { %1806 = vmatpush3.bf16.msra.mxu1 %v1803_v40  ;;  %1778 = vmatpush3.bf16.msra.mxu0 %v1775_v45 }
  0x45   :  { %1808 = vmatprep.subr.bf16.mxu1 %v1807_v46  ;;  %1780 = vmatprep.subr.bf16.mxu0 %v1779_v55 }
  0x48   :  { %1810 = vmatpush3.bf16.msra.mxu1 %v1807_v46  ;;  %1782 = vmatpush3.bf16.msra.mxu0 %v1779_v55  ;;  %v520_v55 = vld [vmem:[#allocation4 + $0x3c8] sm:$0xff] }
  0x49   :  { %1812 = vmatprep.subr.bf16.mxu1 %v1811_v59  ;;  %1784 = vmatprep.subr.bf16.mxu0 %v1783_v2 }
  0x4c   :  { %1814 = vmatpush3.bf16.msra.mxu1 %v1811_v59  ;;  %1786 = vmatpush3.bf16.msra.mxu0 %v1783_v2  ;;  %v620_v59 = vld [vmem:[#allocation4 + $0x440] sm:$0xff]  ;;  %v522_v2 = vld [vmem:[#allocation4 + $0x3d8] sm:$0xff] }
  0x4d   :  { %1816 = vmatprep.subr.bf16.mxu1 %v1815_v4  ;;  %1788 = vmatprep.subr.bf16.mxu0 %v1787_v12 }
  0x50   :  { %1818 = vmatpush3.bf16.msra.mxu1 %v1815_v4  ;;  %1790 = vmatpush3.bf16.msra.mxu0 %v1787_v12  ;;  %v623_v4 = vld [vmem:[#allocation4 + $0x458] sm:$0xff]  ;;  %v1875_v12 = vpack.c.bf16 %v625_v10, %v624_v9 }
  0x51   :  { %1820 = vmatprep.subr.bf16.mxu1 %v1819_v14  ;;  %1792 = vmatprep.subr.bf16.mxu0 %v1791_v25  ;;  %v941_v9 = vld [vmem:[#allocation4 + $0x678] sm:$0xff] }
  0x54   :  { %1822 = vmatpush3.bf16.msra.mxu1 %v1819_v14  ;;  %1794 = vmatpush3.bf16.msra.mxu0 %v1791_v25  ;;  %v526_v14 = vld [vmem:[#allocation4 + $0x3f8] sm:$0xff]  ;;  %v529_v25 = vld [vmem:[#allocation4 + $0x410] sm:$0xff] }
  0x55   :  { %1824 = vmatprep.subr.bf16.mxu1 %v1823_v31  ;;  %1828 = vmatprep.subr.bf16.mxu0 %v1827_v35 }
  0x58   :  { %1826 = vmatpush3.bf16.msra.mxu1 %v1823_v31  ;;  %v717_v31 = vld [vmem:[#allocation4 + $0x4a0] sm:$0xff] }
  0x59   :  { %1860 = vmatprep.subr.bf16.mxu1 %v1859_v36  ;;  %v1891_v33 = vpack.c.bf16 %v718_v32, %v717_v31  ;;  %v950_v31 = vld [vmem:[#allocation4 + $0x6c0] sm:$0xff]  ;;  %v951_v32 = vld [vmem:[#allocation4 + $0x6c8] sm:$0x3] }
  0x92   :  { %v250_v49 = vpop.permute.xlu0 %249 }
  0x93   :  { %v251_v5 = vrot.slane %v250_v49, 4 }
  0x95   :  { %v298_v7 = vpop.permute.xlu1 %297  ;;  %v253_v17 = vsel %vm252_vm4, %v251_v5, %v250_v49  ;;  %v1839_v5 = vpack.c.bf16 %v522_v2, %v521_v63  ;;  %v935_v63 = vld [vmem:[#allocation4 + $0x648] sm:$0xff] }
  0x96   :  { %v274_v60 = vpop.permute.xlu0 %273  ;;  %v299_v18 = vrot.slane %v298_v7, 4 }
  0x97   :  { %v275_v6 = vrot.slane %v274_v60, 4 }
  0x98   :  { %v301_v34 = vsel %vm300_vm6, %v299_v18, %v298_v7  ;;  %v523_v7 = vld [vmem:[#allocation4 + $0x3e0] sm:$0xff] }
  0x99   :  { %v277_v19 = vsel %vm276_vm5, %v275_v6, %v274_v60  ;;  %v621_v60 = vld [vmem:[#allocation4 + $0x448] sm:$0xff]  ;;  %v1871_v6 = vpack.c.bf16 %v623_v4, %v622_v3  ;;  %v937_v3 = vld [vmem:[#allocation4 + $0x658] sm:$0xff] }
  0x9a   :  { %v1867_v62 = vpack.c.bf16 %v621_v60, %v620_v59  ;;  %v932_v59 = vld [vmem:[#allocation4 + $0x630] sm:$0xff]  ;;  %v933_v60 = vld [vmem:[#allocation4 + $0x638] sm:$0xff] }
 0x10a   :  { %v1339_v47 = vpop.f32.mrb[0].mxu0 }
 0x10b   :  { %v1340_v48 = vpop.f32.mrb[1].mxu0 }
 0x10c   :  { %v1341_v50 = vadd.f32 %v1340_v48, %v1339_v47 }
 0x10e   :  { %v225_v54 = vpop.f32.mrb[0].mxu1 }
 0x10f   :  { %v226_v57 = vadd.f32 %v1341_v50, %v225_v54  ;;  %v227_v58 = vpop.f32.mrb[1].mxu1  ;;  %v517_v50 = vld [vmem:[#allocation4 + $0x3b0] sm:$0xff]  ;;  %v519_v54 = vld [vmem:[#allocation4 + $0x3c0] sm:$0xff] }
 0x110   :  { %v1863_v58 = vpack.c.bf16 %v619_v53, %v618_v52  ;;  %v1835_v61 = vpack.c.bf16 %v520_v55, %v519_v54  ;;  %v731_v52 = vld [vmem:[#allocation4 + $0x510] sm:$0xff]  ;;  %v732_v53 = vld [vmem:[#allocation4 + $0x518] sm:$0xff]  ;;  %v930_v55 = vld [vmem:[#allocation4 + $0x620] sm:$0xff] }
 0x111   :  { %233 = vst [vmem:[#allocation2] sm:$0xf] %v226_v57  ;;  %v1831_v57 = vpack.c.bf16 %v518_v51, %v517_v50  ;;  %v729_v50 = vld [vmem:[#allocation4 + $0x500] sm:$0xff]  ;;  %v730_v51 = vld [vmem:[#allocation4 + $0x508] sm:$0xff]  ;;  %v1919_v54 = vpack.c.bf16 %v732_v53, %v731_v52 }
 0x118   :  { %v234_v15 = vld [vmem:[#allocation2] sm:$0xf] }
 0x119   :  { %v242_v16 = vld [vmem:[#allocation2] sm:$0xff]  ;;  %v240_v20 = vmul.f32 %v1294_v11, %v234_v15  ;;  %v1843_v11 = vpack.c.bf16 %v524_v8, %v523_v7  ;;  %v626_v15 = vld [vmem:[#allocation4 + $0x470] sm:$0xff] }
 0x11a   :  { %v255_v21 = vmul.f32 %v253_v17, %v242_v16  ;;  %v279_v29 = vmul.f32 %v277_v19, %v242_v16  ;;  %v303_v37 = vmul.f32 %v301_v34, %v242_v16  ;;  %v627_v16 = vld [vmem:[#allocation4 + $0x478] sm:$0xff]  ;;  %v1847_v17 = vpack.c.bf16 %v526_v14, %v525_v13  ;;  %v527_v19 = vld [vmem:[#allocation4 + $0x400] sm:$0xff]  ;;  %v719_v34 = vld [vmem:[#allocation4 + $0x4b0] sm:$0xff] }
 0x11b   :  { %241 = vst [vmem:[#allocation3] sm:$0xf] %v240_v20  ;;  %v1879_v18 = vpack.c.bf16 %v627_v16, %v626_v15  ;;  %v528_v20 = vld [vmem:[#allocation4 + $0x408] sm:$0xff]  ;;  %v940_v8 = vld [vmem:[#allocation4 + $0x670] sm:$0xff]  ;;  %v945_v15 = vld [vmem:[#allocation4 + $0x698] sm:$0xff] }
 0x11c   :  { %258 = vrot.lane.b32.xlu1 %v255_v21, %s2072_s30  ;;  %v257_v30 = vcombine.high %v255_v21, %v255_v21  ;;  %v281_v38 = vcombine.high %v279_v29, %v279_v29  ;;  %v305_v39 = vcombine.high %v303_v37, %v303_v37  ;;  %v628_v21 = vld [vmem:[#allocation4 + $0x480] sm:$0xff]  ;;  %v1851_v23 = vpack.c.bf16 %v528_v20, %v527_v19  ;;  %v944_v14 = vld [vmem:[#allocation4 + $0x690] sm:$0xff] }
 0x11d   :  { %v1883_v24 = vpack.c.bf16 %v629_v22, %v628_v21  ;;  %v1974_v10 = vpack.c.bf16 %v941_v9, %v940_v8  ;;  %v1980_v16 = vpack.c.bf16 %v945_v15, %v944_v14  ;;  %v962_v19 = vlaneseq  ;;  %v946_v20 = vld [vmem:[#allocation4 + $0x6a0] sm:$0xff]  ;;  %v947_v21 = vld [vmem:[#allocation4 + $0x6a8] sm:$0xff] }
 0x11e   :  { %260 = vrot.lane.b32.xlu0 %v257_v30, %s2072_s30  ;;  %v1887_v30 = vpack.c.bf16 %v631_v28, %v630_v27  ;;  %v1983_v22 = vpack.c.bf16 %v947_v21, %v946_v20  ;;  %v2164_v28 = vld [vmem:[%s2202_s1] sm:$0xff] }
 0x120   :  { %282 = vrot.lane.b32.xlu1 %v279_v29, %s2073_s4  ;;  %v1855_v29 = vpack.c.bf16 %v530_v26, %v529_v25  ;;  %v948_v25 = vld [vmem:[#allocation4 + $0x6b0] sm:$0xff]  ;;  %v949_v26 = vld [vmem:[#allocation4 + $0x6b8] sm:$0xff] }
 0x121   :  { %v1986_v27 = vpack.c.bf16 %v949_v26, %v948_v25 }
 0x122   :  { %284 = vrot.lane.b32.xlu0 %v281_v38, %s2073_s4  ;;  %v722_v38 = vld [vmem:[#allocation4 + $0x4c8] sm:$0xff] }
 0x124   :  { %306 = vrot.lane.b32.xlu1 %v303_v37, %s2074_s5  ;;  %v721_v37 = vld [vmem:[#allocation4 + $0x4c0] sm:$0xff] }
 0x126   :  { %308 = vrot.lane.b32.xlu0 %v305_v39, %s2074_s5  ;;  %v1899_v39 = vpack.c.bf16 %v722_v38, %v721_v37  ;;  %v1298_v38 = vld [vmem:[#allocation4 + $0x1a0] ss:$0 sm:$0xff] }
 0x18e   :  { %v259_v40 = vpop.permute.xlu1 %258 }
 0x190   :  { %v261_v41 = vpop.permute.xlu0 %260 }
 0x191   :  { %v263_v42 = vsel %vm262_vm7, %v259_v40, %v261_v41  ;;  %v723_v40 = vld [vmem:[#allocation4 + $0x4d0] sm:$0xff]  ;;  %v724_v41 = vld [vmem:[#allocation4 + $0x4d8] sm:$0xff] }
 0x192   :  { %265 = vst [vmem:[#allocation3 + $0x4] sm:$0xf] %v263_v42  ;;  %v283_v43 = vpop.permute.xlu1 %282  ;;  %v1903_v42 = vpack.c.bf16 %v724_v41, %v723_v40 }
 0x194   :  { %v285_v44 = vpop.permute.xlu0 %284 }
 0x195   :  { %v287_v45 = vsel %vm286_vm8, %v283_v43, %v285_v44  ;;  %v725_v43 = vld [vmem:[#allocation4 + $0x4e0] sm:$0xff]  ;;  %v726_v44 = vld [vmem:[#allocation4 + $0x4e8] sm:$0xff] }
 0x196   :  { %289 = vst [vmem:[#allocation3 + $0x8] sm:$0xf] %v287_v45  ;;  %v307_v46 = vpop.permute.xlu1 %306  ;;  %v1907_v45 = vpack.c.bf16 %v726_v44, %v725_v43 }
 0x198   :  { %v309_v47 = vpop.permute.xlu0 %308 }
 0x199   :  { %v311_v48 = vsel %vm310_vm9, %v307_v46, %v309_v47  ;;  %v2134_v49 = vld [vmem:[#allocation3] sm:$0xff]  ;;  %v728_v47 = vld [vmem:[#allocation4 + $0x4f8] sm:$0xff] }
 0x19a   :  { %313 = vst [vmem:[#allocation3 + $0xc] sm:$0xf] %v311_v48  ;;  %1519 = vmatprep.mubr.f32.mxu0 %v2134_v49  ;;  %1554 = vmatprep.mubr.f32.mxu1 %v2134_v49  ;;  %v727_v46 = vld [vmem:[#allocation4 + $0x4f0] sm:$0xff] }
 0x19b   :  { %v1911_v48 = vpack.c.bf16 %v728_v47, %v727_v46 }
 0x1a1   :  { %v2138_v56 = vld [vmem:[#allocation3 + $0x8] sm:$0xff] }
 0x1a2   :  { %1520 = vmatmul.mubr.f32.vlgmr.msra.gmra.mrb[2].mxu0 %v2138_v56  ;;  %1555 = vmatmul.mubr.f32.vlgmr.msra.gmra.mrb[2].mxu1 %v2138_v56 }
 0x1a3   :  { %1830 = vmatpush3.bf16.msra.mxu0 %v1827_v35  ;;  %1862 = vmatpush3.bf16.msra.mxu1 %v1859_v36  ;;  %v720_v35 = vld [vmem:[#allocation4 + $0x4b8] sm:$0xff] }
 0x1a4   :  { %1589 = vmatprep.mubr.f32.mxu0 %v2134_v49  ;;  %1624 = vmatprep.mubr.f32.mxu1 %v2134_v49  ;;  %v1895_v36 = vpack.c.bf16 %v720_v35, %v719_v34  ;;  %v1305_v35 = vld [vmem:[#allocation4 + $0x298] ss:$0 sm:$0xff] }
 0x1a5   :  { %1832 = vmatprep.subr.bf16.mxu0 %v1831_v57  ;;  %1864 = vmatprep.subr.bf16.mxu1 %v1863_v58 }
 0x1a7   :  { %1834 = vmatpush3.bf16.msra.mxu0 %v1831_v57  ;;  %1866 = vmatpush3.bf16.msra.mxu1 %v1863_v58  ;;  %v931_v57 = vld [vmem:[#allocation4 + $0x628] sm:$0xff] }
 0x1a8   :  { %1836 = vmatprep.subr.bf16.mxu0 %v1835_v61  ;;  %1868 = vmatprep.subr.bf16.mxu1 %v1867_v62  ;;  %v1959_v58 = vpack.c.bf16 %v931_v57, %v930_v55 }
 0x1ab   :  { %1838 = vmatpush3.bf16.msra.mxu0 %v1835_v61  ;;  %1870 = vmatpush3.bf16.msra.mxu1 %v1867_v62  ;;  %v1962_v61 = vpack.c.bf16 %v933_v60, %v932_v59  ;;  %v934_v62 = vld [vmem:[#allocation4 + $0x640] sm:$0xff] }
 0x1ac   :  { %1840 = vmatprep.subr.bf16.mxu0 %v1839_v5  ;;  %1872 = vmatprep.subr.bf16.mxu1 %v1871_v6  ;;  %v1965_v2 = vpack.c.bf16 %v935_v63, %v934_v62  ;;  %v510_v63 = vld [vmem:[#allocation4 + $0x240] sm:$0xff] }
 0x1af   :  { %1842 = vmatpush3.bf16.msra.mxu0 %v1839_v5  ;;  %1874 = vmatpush3.bf16.msra.mxu1 %v1871_v6  ;;  %v938_v5 = vld [vmem:[#allocation4 + $0x660] sm:$0xff]  ;;  %v939_v6 = vld [vmem:[#allocation4 + $0x668] sm:$0xff] }
 0x1b0   :  { %1844 = vmatprep.subr.bf16.mxu0 %v1843_v11  ;;  %1876 = vmatprep.subr.bf16.mxu1 %v1875_v12  ;;  %v1971_v7 = vpack.c.bf16 %v939_v6, %v938_v5  ;;  %v610_v6 = vld [vmem:[#allocation4 + $0x248] sm:$0xff] }
 0x1b3   :  { %1846 = vmatpush3.bf16.msra.mxu0 %v1843_v11  ;;  %1878 = vmatpush3.bf16.msra.mxu1 %v1875_v12  ;;  %v942_v11 = vld [vmem:[#allocation4 + $0x680] sm:$0xff]  ;;  %v943_v12 = vld [vmem:[#allocation4 + $0x688] sm:$0xff] }
 0x1b4   :  { %1848 = vmatprep.subr.bf16.mxu0 %v1847_v17  ;;  %1880 = vmatprep.subr.bf16.mxu1 %v1879_v18  ;;  %v1977_v13 = vpack.c.bf16 %v943_v12, %v942_v11 }
 0x1b7   :  { %1850 = vmatpush3.bf16.msra.mxu0 %v1847_v17  ;;  %1882 = vmatpush3.bf16.msra.mxu1 %v1879_v18  ;;  %v2076_v17 = vmov 1983009808  }
 0x1b8   :  { %1852 = vmatprep.subr.bf16.mxu0 %v1851_v23  ;;  %1884 = vmatprep.subr.bf16.mxu1 %v1883_v24  ;;  %v960_v18 = vunpack.c.l.s4 %v2076_v17 }
 0x1bb   :  { %1854 = vmatpush3.bf16.msra.mxu0 %v1851_v23  ;;  %1886 = vmatpush3.bf16.msra.mxu1 %v1883_v24  ;;  %v961_v23 = vunpack.c.0.s8 %v960_v18  ;;  %v963_v24 = vshrl.u32 %v962_v19, 7 }
 0x1bc   :  { %1856 = vmatprep.subr.bf16.mxu0 %v1855_v29  ;;  %1888 = vmatprep.subr.bf16.mxu1 %v1887_v30 }
 0x1bf   :  { %1858 = vmatpush3.bf16.msra.mxu0 %v1855_v29  ;;  %1890 = vmatpush3.bf16.msra.mxu1 %v1887_v30  ;;  %v958_v29 = vcombine.high %v2164_v28, %v2164_v28  ;;  %v2168_v30 = vsub.s32 %v961_v23, %v963_v24 }
 0x1c0   :  { %1892 = vmatprep.subr.bf16.mxu0 %v1891_v33  ;;  %1923 = vmatprep.subr.bf16.mxu1 %v2068_v0 }
 0x1c1   :  { %v972_v34 = vrot.slane %v958_v29, %v2168_v30  ;;  %v1239_v37 = vrot.slane %v1305_v35, %v2168_v30  ;;  %v813_v29 = vld [vmem:[#allocation4 + $0x270] sm:$0xff] }
 0x1c2   :  { %1590 = vmatmul.mubr.f32.vlgmr.msra.gmra.mrb[4].mxu0 %v2138_v56  ;;  %1625 = vmatmul.mubr.f32.vlgmr.msra.gmra.mrb[4].mxu1 %v2138_v56 }
 0x1c3   :  { %1894 = vmatpush3.bf16.msra.mxu0 %v1891_v33  ;;  %1659 = vmatprep.mubr.f32.mxu0 %v2134_v49  ;;  %v1915_v49 = vpack.c.bf16 %v730_v51, %v729_v50  ;;  %v1989_v33 = vpack.c.bf16 %v951_v32, %v950_v31 }
 0x1c4   :  { %1896 = vmatprep.subr.bf16.mxu0 %v1895_v36  ;;  %1666 = vmatprep.mubr.msk.f32.mxu1 %vm2075_vm10, %v2069_v1 }
 0x1c5   :  { %1240 = vrot.lane.b32.xlu1 %v1239_v37, %s2078_s8  ;;  %v914_v37 = vld [vmem:[#allocation4 + $0x5a0] sm:$0xff] }
 0x1c7   :  { %1898 = vmatpush3.bf16.msra.mxu0 %v1895_v36  ;;  %v974_v36 = vcombine.high %v972_v34, %v972_v34 }
 0x1c8   :  { %1900 = vmatprep.subr.bf16.mxu0 %v1899_v39 }
 0x1cb   :  { %1902 = vmatpush3.bf16.msra.mxu0 %v1899_v39 }
 0x1cc   :  { %1904 = vmatprep.subr.bf16.mxu0 %v1903_v42 }
 0x1cf   :  { %1906 = vmatpush3.bf16.msra.mxu0 %v1903_v42 }
 0x1d0   :  { %1908 = vmatprep.subr.bf16.mxu0 %v1907_v45 }
 0x1d3   :  { %1910 = vmatpush3.bf16.msra.mxu0 %v1907_v45 }
 0x1d4   :  { %1912 = vmatprep.subr.bf16.mxu0 %v1911_v48 }
 0x1d7   :  { %1914 = vmatpush3.bf16.msra.mxu0 %v1911_v48 }
 0x1d8   :  { %1916 = vmatprep.subr.bf16.mxu0 %v1915_v49 }
 0x1db   :  { %1918 = vmatpush3.bf16.msra.mxu0 %v1915_v49 }
 0x1dc   :  { %1920 = vmatprep.subr.bf16.mxu0 %v1919_v54 }
 0x1df   :  { %1922 = vmatpush3.bf16.msra.mxu0 %v1919_v54 }
 0x1e0   :  { %1958 = vmatprep.subr.bf16.mxu0 %v2068_v0 }
 0x1e2   :  { %1660 = vmatmul.mubr.f32.vlgmr.msra.gmra.mrb[6].mxu0 %v2138_v56  ;;  %v936_v56 = vld [vmem:[#allocation4 + $0x650] sm:$0xff] }
 0x1e3   :  { %1960 = vmatpush1.bf16.msra.mxu0 %v1959_v58  ;;  %v1968_v4 = vpack.c.bf16 %v937_v3, %v936_v56  ;;  %1302 = vmatprep.mubr.msk.f32.mxu0 %vm978_vm14, %v974_v36  ;;  %v509_v3 = vld [vmem:[#allocation4 + $0x238] sm:$0xff] }
 0x1e4   :  { %1961 = vmatprep.subr.bf16.mxu0 %v2068_v0 }
 0x1e7   :  { %1963 = vmatpush1.bf16.msra.mxu0 %v1962_v61 }
 0x1e8   :  { %1964 = vmatprep.subr.bf16.mxu0 %v2068_v0 }
 0x1eb   :  { %1966 = vmatpush1.bf16.msra.mxu0 %v1965_v2  ;;  %v611_v2 = vld [vmem:[#allocation4 + $0x250] sm:$0xff] }
 0x1ec   :  { %1967 = vmatprep.subr.bf16.mxu0 %v2068_v0 }
 0x1ef   :  { %1969 = vmatpush1.bf16.msra.mxu0 %v1968_v4 }
 0x1f0   :  { %1970 = vmatprep.subr.bf16.mxu0 %v2068_v0 }
 0x1f3   :  { %1972 = vmatpush1.bf16.msra.mxu0 %v1971_v7  ;;  %v712_v7 = vld [vmem:[#allocation4 + $0x260] sm:$0xff] }
 0x1f4   :  { %1973 = vmatprep.subr.bf16.mxu0 %v2068_v0 }
 0x1f7   :  { %1975 = vmatpush1.bf16.msra.mxu0 %v1974_v10 }
 0x1f8   :  { %1976 = vmatprep.subr.bf16.mxu0 %v2068_v0 }
 0x1fb   :  { %1978 = vmatpush1.bf16.msra.mxu0 %v1977_v13  ;;  %v711_v13 = vld [vmem:[#allocation4 + $0x258] sm:$0xff] }
 0x1fc   :  { %1979 = vmatprep.subr.bf16.mxu0 %v2068_v0 }
 0x1ff   :  { %1981 = vmatpush1.bf16.msra.mxu0 %v1980_v16 }
 0x200   :  { %1982 = vmatprep.subr.bf16.mxu0 %v2068_v0 }
 0x203   :  { %1984 = vmatpush1.bf16.msra.mxu0 %v1983_v22 }
 0x204   :  { %1985 = vmatprep.subr.bf16.mxu0 %v2068_v0 }
 0x207   :  { %1987 = vmatpush1.bf16.msra.mxu0 %v1986_v27 }
 0x208   :  { %1988 = vmatprep.subr.bf16.mxu0 %v2068_v0 }
 0x20b   :  { %1991 = vmatpush1.bf16.msk.msra.mxu0 %vm1990_vm13, %v1989_v33  ;;  %v812_v33 = vld [vmem:[#allocation4 + $0x268] sm:$0xff] }
 0x20e   :  { %1119 = vmatmul.mubr.f32.vlgmr.msra.gmra.mrb[8].mxu0 %v972_v34 }
 0x275   :  { %v1521_v39 = vpop.f32.mrb[2].mxu0  ;;  %v1556_v40 = vpop.f32.mrb[2].mxu1 }
 0x276   :  { %v409_v41 = vadd.f32 %v1521_v39, %v1298_v38  ;;  %v502_v42 = vadd.f32 %v1556_v40, %v1298_v38  ;;  %v403_v43 = vpop.f32.mrb[3].mxu0  ;;  %v496_v44 = vpop.f32.mrb[3].mxu1  ;;  %v915_v39 = vld [vmem:[#allocation4 + $0x5a8] sm:$0xff] }
 0x277   :  { %v404_v45 = vadd.f32 %v1298_v38, %v403_v43  ;;  %v497_v46 = vadd.f32 %v1298_v38, %v496_v44  ;;  %v1926_v43 = vpack.c.bf16 %v915_v39, %v914_v37  ;;  %v898_v44 = vld [vmem:[#allocation4 + $0x520] sm:$0xff]  ;;  %v1130_v37 = vld [vmem:[#allocation4 + $0x1d8] sm:$0xff] }
 0x278   :  { %v413_v47 = vmax.f32 %v409_v41, 0.0  ;;  %v506_v48 = vmax.f32 %v502_v42, 0.0  ;;  %v2176_v42 = vrot.slane %v2164_v28, %v2168_v30  ;;  %v919_v28 = vld [vmem:[#allocation4 + $0x5c8] sm:$0xff] }
 0x279   :  { %v412_v50 = vmax.f32 %v404_v45, 0.0  ;;  %v505_v51 = vmax.f32 %v497_v46, 0.0  ;;  %v899_v45 = vld [vmem:[#allocation4 + $0x528] sm:$0xff]  ;;  %v916_v46 = vld [vmem:[#allocation4 + $0x5b0] sm:$0xff] }
 0x27a   :  { %v508_v49 = vmax.f32 %v413_v47, %v506_v48  ;;  %v917_v47 = vld [vmem:[#allocation4 + $0x5b8] sm:$0xff] }
 0x27b   :  { %v507_v52 = vmax.f32 %v412_v50, %v505_v51  ;;  %v818_v48 = vld [vmem:[#allocation4 + $0x278] sm:$0x3]  ;;  %v1928_v50 = vpack.c.bf16 %v899_v45, %v898_v44  ;;  %v973_v51 = vcombine.high %v2176_v42, %v2176_v42  ;;  %v1135_v45 = vld [vmem:[#allocation4 + $0x200] sm:$0xff] }
 0x27c   :  { %v512_v10 = vmul.f32 %v510_v63, %v508_v49 }
 0x27d   :  { %v511_v14 = vmul.f32 %v509_v3, %v507_v52  ;;  %v922_v3 = vld [vmem:[#allocation4 + $0x5e0] sm:$0xff] }
 0x295   :  { %v1591_v53 = vpop.f32.mrb[4].mxu0  ;;  %v1626_v54 = vpop.f32.mrb[4].mxu1 }
 0x296   :  { %v603_v55 = vadd.f32 %v1591_v53, %v1298_v38  ;;  %v704_v57 = vadd.f32 %v1626_v54, %v1298_v38  ;;  %v597_v58 = vpop.f32.mrb[5].mxu0  ;;  %v698_v59 = vpop.f32.mrb[5].mxu1  ;;  %v901_v53 = vld [vmem:[#allocation4 + $0x538] sm:$0xff]  ;;  %v918_v54 = vld [vmem:[#allocation4 + $0x5c0] sm:$0xff] }
 0x297   :  { %v598_v60 = vadd.f32 %v1298_v38, %v597_v58  ;;  %v699_v61 = vadd.f32 %v1298_v38, %v698_v59  ;;  %v902_v58 = vld [vmem:[#allocation4 + $0x540] sm:$0xff]  ;;  %v903_v59 = vld [vmem:[#allocation4 + $0x548] sm:$0xff] }
 0x298   :  { %v607_v62 = vmax.f32 %v603_v55, 0.0  ;;  %v708_v5 = vmax.f32 %v704_v57, 0.0  ;;  %v1934_v57 = vpack.c.bf16 %v919_v28, %v918_v54 }
 0x299   :  { %v606_v56 = vmax.f32 %v598_v60, 0.0  ;;  %v707_v9 = vmax.f32 %v699_v61, 0.0  ;;  %v920_v60 = vld [vmem:[#allocation4 + $0x5d0] sm:$0xff]  ;;  %v921_v61 = vld [vmem:[#allocation4 + $0x5d8] sm:$0xff] }
 0x29a   :  { %v609_v4 = vmax.f32 %v508_v49, %v607_v62  ;;  %v1930_v49 = vpack.c.bf16 %v917_v47, %v916_v46  ;;  %v1936_v62 = vpack.c.bf16 %v903_v59, %v902_v58  ;;  %v1938_v63 = vpack.c.bf16 %v921_v61, %v920_v60  ;;  %v1137_v47 = vld [vmem:[#allocation4 + $0x210] sm:$0xff]  ;;  %v1226_v58 = vld [vmem:[%s2202_s1 + $0x6] sm:$0x3]  ;;  %v1241_v59 = vpop.permute.xlu1 %1240 }
 0x29b   :  { %v608_v8 = vmax.f32 %v507_v52, %v606_v56  ;;  %v900_v52 = vld [vmem:[#allocation4 + $0x530] sm:$0xff]  ;;  %v905_v56 = vld [vmem:[#allocation4 + $0x558] sm:$0xff]  ;;  %v1243_v60 = vmul.f32 %v1241_v59, %v1226_v58 }
 0x29c   :  { %v613_v11 = vmul.f32 %v611_v2, %v609_v4  ;;  %v710_v12 = vmax.f32 %v609_v4, %v708_v5  ;;  %v1932_v55 = vpack.c.bf16 %v901_v53, %v900_v52  ;;  %v904_v2 = vld [vmem:[#allocation4 + $0x550] sm:$0xff]  ;;  %v923_v4 = vld [vmem:[#allocation4 + $0x5e8] sm:$0xff] }
 0x29d   :  { %v612_v15 = vmul.f32 %v610_v6, %v608_v8  ;;  %v709_v16 = vmax.f32 %v608_v8, %v707_v9  ;;  %v1940_v5 = vpack.c.bf16 %v905_v56, %v904_v2  ;;  %v1942_v6 = vpack.c.bf16 %v923_v4, %v922_v3  ;;  %v907_v8 = vld [vmem:[#allocation4 + $0x568] sm:$0xff]  ;;  %v924_v9 = vld [vmem:[#allocation4 + $0x5f0] sm:$0xff] }
 0x29e   :  { %v615_v17 = vadd.f32 %v613_v11, %v512_v10  ;;  %v714_v18 = vmul.f32 %v712_v7, %v710_v12  ;;  %v906_v7 = vld [vmem:[#allocation4 + $0x560] sm:$0xff]  ;;  %v925_v10 = vld [vmem:[#allocation4 + $0x5f8] sm:$0xff]  ;;  %v1251_v61 = vrot.slane %v1243_v60, %v2168_v30 }
 0x29f   :  { %v614_v19 = vadd.f32 %v612_v15, %v511_v14  ;;  %v713_v20 = vmul.f32 %v711_v13, %v709_v16  ;;  %v1944_v11 = vpack.c.bf16 %v907_v8, %v906_v7  ;;  %v908_v13 = vld [vmem:[#allocation4 + $0x570] sm:$0xff]  ;;  %v909_v14 = vld [vmem:[#allocation4 + $0x578] sm:$0xff]  ;;  %v926_v15 = vld [vmem:[#allocation4 + $0x600] sm:$0xff] }
 0x2a0   :  { %v716_v21 = vadd.f32 %v714_v18, %v615_v17  ;;  %v1948_v17 = vpack.c.bf16 %v909_v14, %v908_v13  ;;  %1252 = vrot.lane.b32.xlu0 %v1251_v61, %s2079_s11  ;;  %v2080_v14 = vmov 0  }
 0x2a1   :  { %v715_v22 = vadd.f32 %v713_v20, %v614_v19  ;;  %v910_v19 = vld [vmem:[#allocation4 + $0x580] sm:$0xff]  ;;  %v911_v20 = vld [vmem:[#allocation4 + $0x588] sm:$0xff]  ;;  %2032 = vset.pattern.permute.xlu1 %v2080_v14  ;;  %2033 = vset.pattern.permute.xlu0 %v2080_v14 }
 0x2b5   :  { %v1661_v23 = vpop.f32.mrb[6].mxu0 }
 0x2b6   :  { %v805_v24 = vadd.f32 %v1661_v23, %v1298_v38  ;;  %v799_v25 = vpop.f32.mrb[7].mxu0  ;;  %v1952_v23 = vpack.c.bf16 %v911_v20, %v910_v19 }
 0x2b7   :  { %v800_v26 = vadd.f32 %v1298_v38, %v799_v25  ;;  %v912_v25 = vld [vmem:[#allocation4 + $0x590] sm:$0xff] }
 0x2b8   :  { %v809_v27 = vmax.f32 %v805_v24, 0.0 }
 0x2b9   :  { %v808_v31 = vmax.f32 %v800_v26, 0.0  ;;  %v913_v26 = vld [vmem:[#allocation4 + $0x598] sm:$0xff] }
 0x2ba   :  { %v811_v32 = vmax.f32 %v710_v12, %v809_v27  ;;  %v1946_v12 = vpack.c.bf16 %v925_v10, %v924_v9  ;;  %v1956_v27 = vpack.c.bf16 %v913_v26, %v912_v25  ;;  %v1304_v9 = vld [vmem:[#allocation4 + $0x280] ss:$0 sm:$0xff] }
 0x2bb   :  { %v810_v34 = vmax.f32 %v709_v16, %v808_v31  ;;  %v927_v16 = vld [vmem:[#allocation4 + $0x608] sm:$0xff]  ;;  %v1126_v31 = vld [vmem:[#allocation4 + $0x1b8] sm:$0xff] }
 0x2bc   :  { %v815_v35 = vmul.f32 %v813_v29, %v811_v32  ;;  %v1950_v18 = vpack.c.bf16 %v927_v16, %v926_v15  ;;  %v1125_v29 = vld [vmem:[#allocation4 + $0x1b0] sm:$0xff]  ;;  %v1127_v32 = vld [vmem:[#allocation4 + $0x1c0] sm:$0xff] }
 0x2bd   :  { %v814_v36 = vmul.f32 %v812_v33, %v810_v34  ;;  %v1993_v33 = vpack.c.bf16 %v1126_v31, %v1125_v29  ;;  %v1128_v34 = vld [vmem:[#allocation4 + $0x1c8] sm:$0xff] }
 0x2be   :  { %v817_v40 = vadd.f32 %v815_v35, %v716_v21  ;;  %v928_v21 = vld [vmem:[#allocation4 + $0x610] sm:$0xff]  ;;  %v1996_v35 = vpack.c.bf16 %v1128_v34, %v1127_v32 }
 0x2bf   :  { %v816_v41 = vadd.f32 %v814_v36, %v715_v22  ;;  %v929_v22 = vld [vmem:[#allocation4 + $0x618] sm:$0xff]  ;;  %v1129_v36 = vld [vmem:[#allocation4 + $0x1d0] sm:$0xff] }
 0x2c0   :  { %v1954_v24 = vpack.c.bf16 %v929_v22, %v928_v21  ;;  %v1999_v39 = vpack.c.bf16 %v1130_v37, %v1129_v36 }
 0x2c1   :  { %v1924_v38 = vpack.c.bf16 %v817_v40, %v816_v41  ;;  %v1131_v40 = vld [vmem:[#allocation4 + $0x1e0] sm:$0xff]  ;;  %v1132_v41 = vld [vmem:[#allocation4 + $0x1e8] sm:$0xff] }
 0x2c3   :  { %1925 = vmatpush3.bf16.msra.mxu1 %v1924_v38  ;;  %v1136_v38 = vld [vmem:[#allocation4 + $0x208] sm:$0xff] }
 0x2c4   :  { %1927 = vmatprep.subr.bf16.mxu1 %v1926_v43  ;;  %v1134_v43 = vld [vmem:[#allocation4 + $0x1f8] sm:$0xff]  ;;  %v2008_v46 = vpack.c.bf16 %v1136_v38, %v1135_v45 }
 0x2c6   :  { %1667 = vmatmul.mubr.msk.f32.vlgmr.msra.gmra.mrb[6].mxu1 %vm819_vm15, %v818_v48  ;;  %v1138_v48 = vld [vmem:[#allocation4 + $0x218] sm:$0xff] }
 0x2c7   :  { %1929 = vmatpush3.bf16.msra.mxu1 %v1928_v50  ;;  %1048 = vmatprep.mubr.f32.mxu1 %v973_v51  ;;  %v2011_v50 = vpack.c.bf16 %v1138_v48, %v1137_v47  ;;  %v1139_v51 = vld [vmem:[#allocation4 + $0x220] sm:$0xff] }
 0x2c8   :  { %1931 = vmatprep.subr.bf16.mxu1 %v1930_v49  ;;  %v1140_v49 = vld [vmem:[#allocation4 + $0x228] sm:$0xff] }
 0x2c9   :  { %v2014_v53 = vpack.c.bf16 %v1140_v49, %v1139_v51 }
 0x2cb   :  { %1933 = vmatpush3.bf16.msra.mxu1 %v1932_v55 }
 0x2cc   :  { %1935 = vmatprep.subr.bf16.mxu1 %v1934_v57 }
 0x2cf   :  { %1937 = vmatpush3.bf16.msra.mxu1 %v1936_v62 }
 0x2d0   :  { %1939 = vmatprep.subr.bf16.mxu1 %v1938_v63  ;;  %v1300_v63 = vld [vmem:[#allocation4 + $0x1a8] ss:$0 sm:$0xff] }
 0x2d3   :  { %1941 = vmatpush3.bf16.msra.mxu1 %v1940_v5  ;;  %v1303_v5 = vld [vmem:[#allocation4 + $0x230] ss:$0 sm:$0xff] }
 0x2d4   :  { %1943 = vmatprep.subr.bf16.mxu1 %v1942_v6 }
 0x2d7   :  { %1945 = vmatpush3.bf16.msra.mxu1 %v1944_v11 }
 0x2d8   :  { %1947 = vmatprep.subr.bf16.mxu1 %v1946_v12 }
 0x2db   :  { %1949 = vmatpush3.bf16.msra.mxu1 %v1948_v17 }
 0x2dc   :  { %1951 = vmatprep.subr.bf16.mxu1 %v1950_v18  ;;  %v1306_v18 = vld [vmem:[#allocation4 + $0x288] ss:$0 sm:$0xff] }
 0x2df   :  { %1953 = vmatpush3.bf16.msra.mxu1 %v1952_v23 }
 0x2e0   :  { %1955 = vmatprep.subr.bf16.mxu1 %v1954_v24 }
 0x2e1   :  { %v1120_v52 = vpop.f32.mrb[8].mxu0 }
 0x2e2   :  { %v1122_v54 = vpop.f32.mrb[9].mxu0 }
 0x2e3   :  { %1957 = vmatpush3.bf16.msra.mxu1 %v1956_v27  ;;  %v1273_v27 = vld [vmem:[#allocation4 + $0x290] sm:$0x3] }
 0x2e4   :  { %1992 = vmatprep.subr.bf16.mxu1 %v2068_v0 }
 0x2e6   :  { %1049 = vmatmul.mubr.f32.vlgmr.msra.gmra.mrb[8].mxu1 %v2176_v42  ;;  %v2002_v42 = vpack.c.bf16 %v1132_v41, %v1131_v40 }
 0x2e7   :  { %1701 = vmatprep.mubr.msk.f32.mxu1 %vm2075_vm10, %v2069_v1  ;;  %1994 = vmatpush3.bf16.msra.mxu1 %v1993_v33  ;;  %v1133_v1 = vld [vmem:[#allocation4 + $0x1f0] sm:$0xff] }
 0x2e8   :  { %1995 = vmatprep.subr.bf16.mxu1 %v2068_v0  ;;  %v2005_v44 = vpack.c.bf16 %v1134_v43, %v1133_v1 }
 0x2eb   :  { %1997 = vmatpush3.bf16.msra.mxu1 %v1996_v35 }
 0x2ec   :  { %1998 = vmatprep.subr.bf16.mxu1 %v2068_v0 }
 0x2ef   :  { %2000 = vmatpush3.bf16.msra.mxu1 %v1999_v39 }
 0x2f0   :  { %2001 = vmatprep.subr.bf16.mxu1 %v2068_v0 }
 0x2f3   :  { %2003 = vmatpush3.bf16.msra.mxu1 %v2002_v42 }
 0x2f4   :  { %2004 = vmatprep.subr.bf16.mxu1 %v2068_v0 }
 0x2f7   :  { %2006 = vmatpush3.bf16.msra.mxu1 %v2005_v44 }
 0x2f8   :  { %2007 = vmatprep.subr.bf16.mxu1 %v2068_v0 }
 0x2fb   :  { %2009 = vmatpush3.bf16.msra.mxu1 %v2008_v46 }
 0x2fc   :  { %2010 = vmatprep.subr.bf16.mxu1 %v2068_v0 }
 0x2ff   :  { %2012 = vmatpush3.bf16.msra.mxu1 %v2011_v50 }
 0x300   :  { %2013 = vmatprep.subr.bf16.mxu1 %v2068_v0 }
 0x303   :  { %2015 = vmatpush3.bf16.msra.mxu1 %v2014_v53 }
 0x312   :  { %v1253_v12 = vpop.permute.xlu0 %1252 }
 0x313   :  { %v1256_v13 = vsel %vm1255_vm0, %v1253_v12, 0.0 }
 0x399   :  { %v889_v28 = vpop.f32.mrb[6].mxu1 }
 0x39a   :  { %v1668_v55 = vpop.f32.mrb[7].mxu1  ;;  %v894_v57 = vsel %vm893_vm11, %v889_v28, 0.0 }
 0x39b   :  { %895 = vadd.xlane.f32.xlu1 %v894_v57 }
 0x3b9   :  { %v1467_v0 = vpop.f32.mrb[8].mxu1 }
 0x3ba   :  { %v1468_v62 = vpop.f32.mrb[9].mxu1 }
 0x3bb   :  { %v1469_v2 = vadd.f32 %v1468_v62, %v1467_v0 }
 0x3bd   :  { %v1051_v56 = vadd.f32 %v1469_v2, %v1300_v63 }
 0x3bf   :  { %v1121_v3 = vadd.f32 %v1120_v52, %v1051_v56 }
 0x3c1   :  { %v1124_v4 = vmax.f32 %v1121_v3, 0.0 }
 0x3c3   :  { %1702 = vmatmul.mubr.f32.vlgmr.msra.gmra.mrb[10].mxu1 %v1124_v4 }
 0x428   :  { %v896_v16 = vpop.xlane.xlu1 %895 }
 0x496   :  { %v1212_v6 = vpop.f32.mrb[10].mxu1 }
 0x497   :  { %v1213_v7 = vadd.f32 %v1303_v5, %v1212_v6  ;;  %v1703_v8 = vpop.f32.mrb[11].mxu1 }
 0x499   :  { %v1216_v10 = vmax.f32 %v1213_v7, 0.0 }
 0x49b   :  { %v1222_v11 = vmul.f32 %v1304_v9, %v1216_v10 }
 0x49d   :  { %v1223_v30 = vsel %vm893_vm11, %v1222_v11, 0.0 }
 0x49e   :  { %1224 = vadd.xlane.f32.xlu0 %v1223_v30 }
 0x4a2   :  { %1257 = vadd.xlane.f32.xlu0 %v1256_v13 }
 0x52b   :  { %v1225_v15 = vpop.xlane.xlu0 %1224 }
 0x52c   :  { %v1259_v17 = vadd.f32 %v1225_v15, %v896_v16 }
 0x52f   :  { %v1258_v19 = vpop.xlane.xlu0 %1257 }
 0x530   :  { %v1260_v20 = vadd.f32 %v1259_v17, %v1258_v19 }
 0x532   :  { %v1266_v21 = vadd.f32 %v1306_v18, %v1260_v20 }
 0x534   :  { %v1267_v22 = vsub.f32 0.0, %v1266_v21 }
 0x536   :  { %v1268_v23 = vmul.f32 1.442695, %v1267_v22 }
 0x538   :  { %2037 = vpow2.f32 %v1268_v23 }
 0x542   :  { %v2038_v24 = vpop.eup %2037 }
 0x543   :  { %v1270_v25 = vadd.f32 1.0, %v2038_v24 }
 0x545   :  { %2039 = vrcp.f32 %v1270_v25 }
 0x54f   :  { %v2040_v26 = vpop.eup %2039 }
 0x550   :  { %1276 = vperm.xlu1 %2032, %v2040_v26  }
 0x5cf   :  { %v1277_v29 = vpop.permute.xlu1 %1276 }
 0x5d0   :  { %v1279_v31 = vmul.f32 %v1277_v29, %v1273_v27 }
 0x5d2   :  { %v1280_v32 = vsel %vm893_vm11, %v1279_v31, 0.0 }
 0x5d3   :  { %v1281_v33 = vrot.slane %v1280_v32, 4 }
 0x5d5   :  { %v1282_v34 = vadd.f32 %v1281_v33, %v1280_v32 }
 0x5d7   :  { %v1283_v35 = vrot.slane %v1282_v34, 2 }
 0x5d9   :  { %v1284_v36 = vadd.f32 %v1283_v35, %v1282_v34 }
 0x5db   :  { %v1285_v37 = vrot.slane %v1284_v36, 1 }
 0x5dd   :  { %v1286_v39 = vadd.f32 %v1285_v37, %v1284_v36 }
 0x5df   :  { %1287 = vst [vmem:[%s2204_s3] sm:$0x1] %v1286_v39 }
 0x5e0   :  { %1292 = vsyncpa [#allocation5], 1 }

</bundles_post_ra>
